<compile_context>
chip_gen: v7x
topology: tpu7x:2x2x1
jax: 0.10.0
libtpu: 0.0.40
codegen_flags: <defaults>
</compile_context>

<pallas_src>
import functools

import jax
import jax.numpy as jnp
from jax.experimental import pallas as pl
from jax.experimental.pallas import tpu as pltpu

NEG_SLOPE = 0.01   # LeakyReLU slope
BN_EPS = 1e-5      # PyTorch BatchNorm2d default
LANE = 128


def _round_up(x, m):
    return ((x + m - 1) // m) * m


def _leaky(y):
    return jnp.where(y >= 0.0, y, NEG_SLOPE * y)


# ----------------------------------------------------------------------------
# Fused kernel: conv1(3x3,s2) + BN1 + LReLU + conv2(3x3,s1) + BN2 + LReLU
# for one image per grid step. All conv taps are generated in-kernel.
# ----------------------------------------------------------------------------
def _double_conv_kernel(xee_ref, xeo_ref, xoe_ref, xoo_ref,
                        w1_ref, b1_ref, w2_ref, b2_ref,
                        o_ref, y1pad_ref, *, Ho, Wo):
    M = Ho * Wo

    def tap_dot(slab_f32, w_tap):
        # reshape happens on f32 (8-aligned sublane merge); operands are cast
        # to bf16 right before the MXU dot, accumulation stays f32.
        lhs = slab_f32.reshape(M, slab_f32.shape[-1]).astype(jnp.bfloat16)
        return jnp.dot(lhs, w_tap, preferred_element_type=jnp.float32)

    # ---- conv1: 3x3 stride-2 as 9 unit-stride taps on the parity planes ----
    # tap index t = dy*3 + dx; plane / (di, dj) offset follow from the parity
    # of (2i+dy, 2j+dx) in the padded input.
    taps1 = (
        (xee_ref, 0, 0, 0), (xeo_ref, 0, 0, 1), (xee_ref, 0, 1, 2),
        (xoe_ref, 0, 0, 3), (xoo_ref, 0, 0, 4), (xoe_ref, 0, 1, 5),
        (xee_ref, 1, 0, 6), (xeo_ref, 1, 0, 7), (xee_ref, 1, 1, 8),
    )
    acc1 = None
    for plane_ref, di, dj, t in taps1:
        slab = plane_ref[di:di + Ho, dj:dj + Wo, :].astype(jnp.float32)
        part = tap_dot(slab, w1_ref[t])
        acc1 = part if acc1 is None else acc1 + part

    y1 = _leaky(acc1 + b1_ref[...])                     # (M, Cmid_p) f32

    # ---- stage y1 with a 1-pixel zero halo in VMEM (never written to HBM) --
    y1pad_ref[...] = jnp.zeros(y1pad_ref.shape, y1pad_ref.dtype)
    y1pad_ref[1:Ho + 1, 1:Wo + 1, :] = y1.reshape(Ho, Wo, y1.shape[-1])

    # ---- conv2: 3x3 stride-1, same 9-tap accumulation on the VMEM scratch --
    acc2 = None
    for dy in range(3):
        for dx in range(3):
            slab = y1pad_ref[dy:dy + Ho, dx:dx + Wo, :]
            part = tap_dot(slab, w2_ref[dy * 3 + dx])
            acc2 = part if acc2 is None else acc2 + part

    # lane-dense (Cout padded to 128) unmasked store
    o_ref[...] = _leaky(acc2 + b2_ref[...]).astype(o_ref.dtype)


# ----------------------------------------------------------------------------
# BN folding helpers
# ----------------------------------------------------------------------------
def _fold_bn(gamma, beta, running_mean, running_var):
    scale = gamma / jnp.sqrt(running_var + BN_EPS)
    shift = beta - running_mean * scale
    return scale, shift


# ----------------------------------------------------------------------------
# DoubleConv_s2 forward (public wrapper: NCHW in / NCHW out)
# ----------------------------------------------------------------------------
def double_conv_s2(x_nchw, params):
    x = jnp.transpose(x_nchw, (0, 2, 3, 1)).astype(jnp.float32)   # NHWC
    N, H, W, Cin = x.shape
    assert H % 2 == 0 and W % 2 == 0, "kernel assumes even H, W"
    Ho, Wo = H // 2, W // 2
    assert Wo % 8 == 0, "kernel assumes (W // 2) % 8 == 0 (sublane alignment)"

    Cmid = params["w1"].shape[-1]
    Cout = params["w2"].shape[-1]
    Cmid_p = _round_up(Cmid, LANE)
    Cout_p = _round_up(Cout, LANE)
    M = Ho * Wo

    # --- fold BN (inference) into the conv weights and a single f32 bias ---
    s1, t1 = _fold_bn(params["g1"], params["be1"], params["rm1"], params["rv1"])
    w1 = (params["w1"] * s1).reshape(9, Cin, Cmid)          # scale out-channels
    b1 = t1 + params["b1"] * s1
    s2, t2 = _fold_bn(params["g2"], params["be2"], params["rm2"], params["rv2"])
    w2 = (params["w2"] * s2).reshape(9, Cmid, Cout)
    b2 = t2 + params["b2"] * s2

    # --- pad channels to the 128-lane width (zeros); sliced off afterwards ---
    w1p = jnp.pad(w1, ((0, 0), (0, 0), (0, Cmid_p - Cmid))).astype(jnp.bfloat16)
    b1p = jnp.pad(b1, (0, Cmid_p - Cmid)).reshape(1, Cmid_p).astype(jnp.float32)
    w2p = jnp.pad(w2, ((0, 0), (0, Cmid_p - Cmid),
                       (0, Cout_p - Cout))).astype(jnp.bfloat16)
    b2p = jnp.pad(b2, (0, Cout_p - Cout)).reshape(1, Cout_p).astype(jnp.float32)

    # --- cheap (~1x) input prep: 1-px zero pad + parity split so the stride-2
    #     conv becomes unit-stride inside the kernel; activations in bf16 ---
    xb = x.astype(jnp.bfloat16)
    xp = jnp.pad(xb, ((0, 0), (1, 1), (1, 1), (0, 0)))      # (N, H+2, W+2, Cin)
    x_ee = xp[:, 0::2, 0::2, :]                             # (N, Ho+1, Wo+1, Cin)
    x_eo = xp[:, 0::2, 1::2, :]
    x_oe = xp[:, 1::2, 0::2, :]
    x_oo = xp[:, 1::2, 1::2, :]

    plane_spec = pl.BlockSpec((None, Ho + 1, Wo + 1, Cin),
                              lambda n: (n, 0, 0, 0))
    kernel = functools.partial(_double_conv_kernel, Ho=Ho, Wo=Wo)

    out = pl.pallas_call(
        kernel,
        out_shape=jax.ShapeDtypeStruct((N, M, Cout_p), jnp.float32),
        grid_spec=pltpu.PrefetchScalarGridSpec(
            num_scalar_prefetch=0,
            grid=(N,),
            in_specs=[
                plane_spec, plane_spec, plane_spec, plane_spec,
                pl.BlockSpec((9, Cin, Cmid_p), lambda n: (0, 0, 0)),
                pl.BlockSpec((1, Cmid_p), lambda n: (0, 0)),
                pl.BlockSpec((9, Cmid_p, Cout_p), lambda n: (0, 0, 0)),
                pl.BlockSpec((1, Cout_p), lambda n: (0, 0)),
            ],
            out_specs=pl.BlockSpec((None, M, Cout_p), lambda n: (n, 0, 0)),
            scratch_shapes=[
                pltpu.VMEM((Ho + 2, Wo + 2, Cmid_p), jnp.float32),  # y1 + halo
            ],
        ),
        compiler_params=pltpu.CompilerParams(
            dimension_semantics=("parallel",)),
    )(x_ee, x_eo, x_oe, x_oo, w1p, b1p, w2p, b2p)

    out = out[:, :, :Cout].reshape(N, Ho, Wo, Cout)
    return jnp.transpose(out, (0, 3, 1, 2))                 # back to NCHW


# ----------------------------------------------------------------------------
# Pure-JAX f32 reference (true module semantics, for correctness check)
# ----------------------------------------------------------------------------
def double_conv_s2_ref(x_nchw, params):
    x = jnp.transpose(x_nchw, (0, 2, 3, 1)).astype(jnp.float32)

    def conv_bn_lrelu(x, w_hwio, b_conv, g, be, rm, rv, stride):
        y = jax.lax.conv_general_dilated(
            x, w_hwio, window_strides=(stride, stride),
            padding=((1, 1), (1, 1)),
            dimension_numbers=("NHWC", "HWIO", "NHWC"))
        y = y + b_conv
        s, b = _fold_bn(g, be, rm, rv)
        y = y * s + b
        return jnp.where(y >= 0.0, y, NEG_SLOPE * y)

    y = conv_bn_lrelu(x, params["w1"], params["b1"], params["g1"],
                      params["be1"], params["rm1"], params["rv1"], 2)
    y = conv_bn_lrelu(y, params["w2"], params["b2"], params["g2"],
                      params["be2"], params["rm2"], params["rv2"], 1)
    return jnp.transpose(y, (0, 3, 1, 2))


# ----------------------------------------------------------------------------
def make_params(key, cin, cmid, cout):
    ks = jax.random.split(key, 12)
    return {
        # conv weights in HWIO layout (3,3,Cin,Cout)
        "w1": 0.1 * jax.random.normal(ks[0], (3, 3, cin, cmid), jnp.float32),
        "b1": 0.1 * jax.random.normal(ks[1], (cmid,), jnp.float32),
        "g1": jax.random.uniform(ks[2], (cmid,), jnp.float32, 0.5, 1.5),
        "be1": 0.1 * jax.random.normal(ks[3], (cmid,), jnp.float32),
        "rm1": 0.1 * jax.random.normal(ks[4], (cmid,), jnp.float32),
        "rv1": jax.random.uniform(ks[5], (cmid,), jnp.float32, 0.5, 1.5),
        "w2": 0.1 * jax.random.normal(ks[6], (3, 3, cmid, cout), jnp.float32),
        "b2": 0.1 * jax.random.normal(ks[7], (cout,), jnp.float32),
        "g2": jax.random.uniform(ks[8], (cout,), jnp.float32, 0.5, 1.5),
        "be2": 0.1 * jax.random.normal(ks[9], (cout,), jnp.float32),
        "rm2": 0.1 * jax.random.normal(ks[10], (cout,), jnp.float32),
        "rv2": jax.random.uniform(ks[11], (cout,), jnp.float32, 0.5, 1.5),
    }


if __name__ == "__main__":
    key = jax.random.PRNGKey(0)
    kx, kp = jax.random.split(key)

    N, Cin, H, W = 2, 4, 16, 16
    Cout = 8  # mid_channels defaults to out_channels
    x = jax.random.normal(kx, (N, Cin, H, W), jnp.float32)
    params = make_params(kp, Cin, Cout, Cout)

    out = jax.jit(double_conv_s2)(x, params)
    out = jax.block_until_ready(out)

    ref = jax.block_until_ready(double_conv_s2_ref(x, params))
    assert out.shape == (N, Cout, H // 2, W // 2), out.shape
    # bf16 matmul operands (f32 accumulation) vs. the pure-f32 reference:
    # allow a correspondingly loosened tolerance.
    assert jnp.allclose(out, ref, atol=5e-2, rtol=5e-2), \
        float(jnp.max(jnp.abs(out - ref)))

    print("KERNEL_OK")
</pallas_src>

<mosaic_0001>
module attributes {stable_mosaic.version = 11 : i64} {
  func.func @_double_conv_kernel(%arg0: i32, %arg1: memref<1x9x9x4xbf16, #tpu.memory_space<vmem>>, %arg2: memref<1x9x9x4xbf16, #tpu.memory_space<vmem>>, %arg3: memref<1x9x9x4xbf16, #tpu.memory_space<vmem>>, %arg4: memref<1x9x9x4xbf16, #tpu.memory_space<vmem>>, %arg5: memref<9x4x128xbf16, #tpu.memory_space<vmem>>, %arg6: memref<1x128xf32, #tpu.memory_space<vmem>>, %arg7: memref<9x128x128xbf16, #tpu.memory_space<vmem>>, %arg8: memref<1x128xf32, #tpu.memory_space<vmem>>, %arg9: memref<1x64x128xf32, #tpu.memory_space<vmem>>, %arg10: memref<10x10x128xf32, #tpu.memory_space<vmem>>) attributes {dimension_semantics = [#tpu.dimension_semantics<parallel>], iteration_bounds = array<i64: 2>, scalar_prefetch = 0 : i64, scratch_operands = 1 : i64, tpu.core_type = #tpu.core_type<tc>, window_params = [{transform_indices = @transform_0, window_bounds = array<i64: 1, 9, 9, 4>}, {transform_indices = @transform_1, window_bounds = array<i64: 1, 9, 9, 4>}, {transform_indices = @transform_2, window_bounds = array<i64: 1, 9, 9, 4>}, {transform_indices = @transform_3, window_bounds = array<i64: 1, 9, 9, 4>}, {pipeline_mode = #tpu.pipeline_mode<synchronous>, transform_indices = @transform_4, window_bounds = array<i64: 9, 4, 128>}, {pipeline_mode = #tpu.pipeline_mode<synchronous>, transform_indices = @transform_5, window_bounds = array<i64: 1, 128>}, {pipeline_mode = #tpu.pipeline_mode<synchronous>, transform_indices = @transform_6, window_bounds = array<i64: 9, 128, 128>}, {pipeline_mode = #tpu.pipeline_mode<synchronous>, transform_indices = @transform_7, window_bounds = array<i64: 1, 128>}, {transform_indices = @transform_8, window_bounds = array<i64: 1, 64, 128>}]} {
    %c0 = arith.constant 0 : index
    %c0_0 = arith.constant 0 : index
    %c0_1 = arith.constant 0 : index
    %c0_2 = arith.constant 0 : index
    %0 = vector.load %arg1[%c0, %c0_0, %c0_1, %c0_2] : memref<1x9x9x4xbf16, #tpu.memory_space<vmem>>, vector<1x8x8x4xbf16>
    %1 = vector.shape_cast %0 : vector<1x8x8x4xbf16> to vector<8x8x4xbf16>
    %2 = arith.extf %1 : vector<8x8x4xbf16> to vector<8x8x4xf32>
    %c0_3 = arith.constant 0 : index
    %c0_4 = arith.constant 0 : index
    %c0_5 = arith.constant 0 : index
    %3 = vector.load %arg5[%c0_3, %c0_4, %c0_5] : memref<9x4x128xbf16, #tpu.memory_space<vmem>>, vector<1x4x128xbf16>
    %4 = vector.shape_cast %3 : vector<1x4x128xbf16> to vector<4x128xbf16>
    %5 = vector.shape_cast %2 : vector<8x8x4xf32> to vector<64x4xf32>
    %6 = arith.truncf %5 : vector<64x4xf32> to vector<64x4xbf16>
    %cst = arith.constant dense<0.000000e+00> : vector<64x128xf32>
    %7 = tpu.matmul %6, %4, %cst {dimension_numbers = #tpu.dot_dimension_numbers<[1], [0], [0], [1], [0, 0, 1, 1], [], []>} : vector<64x4xbf16>, vector<4x128xbf16>, vector<64x128xf32> -> vector<64x128xf32>
    %c0_6 = arith.constant 0 : index
    %c0_7 = arith.constant 0 : index
    %c0_8 = arith.constant 0 : index
    %c0_9 = arith.constant 0 : index
    %8 = vector.load %arg2[%c0_6, %c0_7, %c0_8, %c0_9] : memref<1x9x9x4xbf16, #tpu.memory_space<vmem>>, vector<1x8x8x4xbf16>
    %9 = vector.shape_cast %8 : vector<1x8x8x4xbf16> to vector<8x8x4xbf16>
    %10 = arith.extf %9 : vector<8x8x4xbf16> to vector<8x8x4xf32>
    %c1 = arith.constant 1 : index
    %c0_10 = arith.constant 0 : index
    %c0_11 = arith.constant 0 : index
    %11 = vector.load %arg5[%c1, %c0_10, %c0_11] : memref<9x4x128xbf16, #tpu.memory_space<vmem>>, vector<1x4x128xbf16>
    %12 = vector.shape_cast %11 : vector<1x4x128xbf16> to vector<4x128xbf16>
    %13 = vector.shape_cast %10 : vector<8x8x4xf32> to vector<64x4xf32>
    %14 = arith.truncf %13 : vector<64x4xf32> to vector<64x4xbf16>
    %cst_12 = arith.constant dense<0.000000e+00> : vector<64x128xf32>
    %15 = tpu.matmul %14, %12, %cst_12 {dimension_numbers = #tpu.dot_dimension_numbers<[1], [0], [0], [1], [0, 0, 1, 1], [], []>} : vector<64x4xbf16>, vector<4x128xbf16>, vector<64x128xf32> -> vector<64x128xf32>
    %16 = arith.addf %7, %15 : vector<64x128xf32>
    %c0_13 = arith.constant 0 : index
    %c0_14 = arith.constant 0 : index
    %c1_15 = arith.constant 1 : index
    %c0_16 = arith.constant 0 : index
    %17 = vector.load %arg1[%c0_13, %c0_14, %c1_15, %c0_16] : memref<1x9x9x4xbf16, #tpu.memory_space<vmem>>, vector<1x8x8x4xbf16>
    %18 = vector.shape_cast %17 : vector<1x8x8x4xbf16> to vector<8x8x4xbf16>
    %19 = arith.extf %18 : vector<8x8x4xbf16> to vector<8x8x4xf32>
    %c2 = arith.constant 2 : index
    %c0_17 = arith.constant 0 : index
    %c0_18 = arith.constant 0 : index
    %20 = vector.load %arg5[%c2, %c0_17, %c0_18] : memref<9x4x128xbf16, #tpu.memory_space<vmem>>, vector<1x4x128xbf16>
    %21 = vector.shape_cast %20 : vector<1x4x128xbf16> to vector<4x128xbf16>
    %22 = vector.shape_cast %19 : vector<8x8x4xf32> to vector<64x4xf32>
    %23 = arith.truncf %22 : vector<64x4xf32> to vector<64x4xbf16>
    %cst_19 = arith.constant dense<0.000000e+00> : vector<64x128xf32>
    %24 = tpu.matmul %23, %21, %cst_19 {dimension_numbers = #tpu.dot_dimension_numbers<[1], [0], [0], [1], [0, 0, 1, 1], [], []>} : vector<64x4xbf16>, vector<4x128xbf16>, vector<64x128xf32> -> vector<64x128xf32>
    %25 = arith.addf %16, %24 : vector<64x128xf32>
    %c0_20 = arith.constant 0 : index
    %c0_21 = arith.constant 0 : index
    %c0_22 = arith.constant 0 : index
    %c0_23 = arith.constant 0 : index
    %26 = vector.load %arg3[%c0_20, %c0_21, %c0_22, %c0_23] : memref<1x9x9x4xbf16, #tpu.memory_space<vmem>>, vector<1x8x8x4xbf16>
    %27 = vector.shape_cast %26 : vector<1x8x8x4xbf16> to vector<8x8x4xbf16>
    %28 = arith.extf %27 : vector<8x8x4xbf16> to vector<8x8x4xf32>
    %c3 = arith.constant 3 : index
    %c0_24 = arith.constant 0 : index
    %c0_25 = arith.constant 0 : index
    %29 = vector.load %arg5[%c3, %c0_24, %c0_25] : memref<9x4x128xbf16, #tpu.memory_space<vmem>>, vector<1x4x128xbf16>
    %30 = vector.shape_cast %29 : vector<1x4x128xbf16> to vector<4x128xbf16>
    %31 = vector.shape_cast %28 : vector<8x8x4xf32> to vector<64x4xf32>
    %32 = arith.truncf %31 : vector<64x4xf32> to vector<64x4xbf16>
    %cst_26 = arith.constant dense<0.000000e+00> : vector<64x128xf32>
    %33 = tpu.matmul %32, %30, %cst_26 {dimension_numbers = #tpu.dot_dimension_numbers<[1], [0], [0], [1], [0, 0, 1, 1], [], []>} : vector<64x4xbf16>, vector<4x128xbf16>, vector<64x128xf32> -> vector<64x128xf32>
    %34 = arith.addf %25, %33 : vector<64x128xf32>
    %c0_27 = arith.constant 0 : index
    %c0_28 = arith.constant 0 : index
    %c0_29 = arith.constant 0 : index
    %c0_30 = arith.constant 0 : index
    %35 = vector.load %arg4[%c0_27, %c0_28, %c0_29, %c0_30] : memref<1x9x9x4xbf16, #tpu.memory_space<vmem>>, vector<1x8x8x4xbf16>
    %36 = vector.shape_cast %35 : vector<1x8x8x4xbf16> to vector<8x8x4xbf16>
    %37 = arith.extf %36 : vector<8x8x4xbf16> to vector<8x8x4xf32>
    %c4 = arith.constant 4 : index
    %c0_31 = arith.constant 0 : index
    %c0_32 = arith.constant 0 : index
    %38 = vector.load %arg5[%c4, %c0_31, %c0_32] : memref<9x4x128xbf16, #tpu.memory_space<vmem>>, vector<1x4x128xbf16>
    %39 = vector.shape_cast %38 : vector<1x4x128xbf16> to vector<4x128xbf16>
    %40 = vector.shape_cast %37 : vector<8x8x4xf32> to vector<64x4xf32>
    %41 = arith.truncf %40 : vector<64x4xf32> to vector<64x4xbf16>
    %cst_33 = arith.constant dense<0.000000e+00> : vector<64x128xf32>
    %42 = tpu.matmul %41, %39, %cst_33 {dimension_numbers = #tpu.dot_dimension_numbers<[1], [0], [0], [1], [0, 0, 1, 1], [], []>} : vector<64x4xbf16>, vector<4x128xbf16>, vector<64x128xf32> -> vector<64x128xf32>
    %43 = arith.addf %34, %42 : vector<64x128xf32>
    %c0_34 = arith.constant 0 : index
    %c0_35 = arith.constant 0 : index
    %c1_36 = arith.constant 1 : index
    %c0_37 = arith.constant 0 : index
    %44 = vector.load %arg3[%c0_34, %c0_35, %c1_36, %c0_37] : memref<1x9x9x4xbf16, #tpu.memory_space<vmem>>, vector<1x8x8x4xbf16>
    %45 = vector.shape_cast %44 : vector<1x8x8x4xbf16> to vector<8x8x4xbf16>
    %46 = arith.extf %45 : vector<8x8x4xbf16> to vector<8x8x4xf32>
    %c5 = arith.constant 5 : index
    %c0_38 = arith.constant 0 : index
    %c0_39 = arith.constant 0 : index
    %47 = vector.load %arg5[%c5, %c0_38, %c0_39] : memref<9x4x128xbf16, #tpu.memory_space<vmem>>, vector<1x4x128xbf16>
    %48 = vector.shape_cast %47 : vector<1x4x128xbf16> to vector<4x128xbf16>
    %49 = vector.shape_cast %46 : vector<8x8x4xf32> to vector<64x4xf32>
    %50 = arith.truncf %49 : vector<64x4xf32> to vector<64x4xbf16>
    %cst_40 = arith.constant dense<0.000000e+00> : vector<64x128xf32>
    %51 = tpu.matmul %50, %48, %cst_40 {dimension_numbers = #tpu.dot_dimension_numbers<[1], [0], [0], [1], [0, 0, 1, 1], [], []>} : vector<64x4xbf16>, vector<4x128xbf16>, vector<64x128xf32> -> vector<64x128xf32>
    %52 = arith.addf %43, %51 : vector<64x128xf32>
    %c0_41 = arith.constant 0 : index
    %c1_42 = arith.constant 1 : index
    %c0_43 = arith.constant 0 : index
    %c0_44 = arith.constant 0 : index
    %53 = vector.load %arg1[%c0_41, %c1_42, %c0_43, %c0_44] : memref<1x9x9x4xbf16, #tpu.memory_space<vmem>>, vector<1x8x8x4xbf16>
    %54 = vector.shape_cast %53 : vector<1x8x8x4xbf16> to vector<8x8x4xbf16>
    %55 = arith.extf %54 : vector<8x8x4xbf16> to vector<8x8x4xf32>
    %c6 = arith.constant 6 : index
    %c0_45 = arith.constant 0 : index
    %c0_46 = arith.constant 0 : index
    %56 = vector.load %arg5[%c6, %c0_45, %c0_46] : memref<9x4x128xbf16, #tpu.memory_space<vmem>>, vector<1x4x128xbf16>
    %57 = vector.shape_cast %56 : vector<1x4x128xbf16> to vector<4x128xbf16>
    %58 = vector.shape_cast %55 : vector<8x8x4xf32> to vector<64x4xf32>
    %59 = arith.truncf %58 : vector<64x4xf32> to vector<64x4xbf16>
    %cst_47 = arith.constant dense<0.000000e+00> : vector<64x128xf32>
    %60 = tpu.matmul %59, %57, %cst_47 {dimension_numbers = #tpu.dot_dimension_numbers<[1], [0], [0], [1], [0, 0, 1, 1], [], []>} : vector<64x4xbf16>, vector<4x128xbf16>, vector<64x128xf32> -> vector<64x128xf32>
    %61 = arith.addf %52, %60 : vector<64x128xf32>
    %c0_48 = arith.constant 0 : index
    %c1_49 = arith.constant 1 : index
    %c0_50 = arith.constant 0 : index
    %c0_51 = arith.constant 0 : index
    %62 = vector.load %arg2[%c0_48, %c1_49, %c0_50, %c0_51] : memref<1x9x9x4xbf16, #tpu.memory_space<vmem>>, vector<1x8x8x4xbf16>
    %63 = vector.shape_cast %62 : vector<1x8x8x4xbf16> to vector<8x8x4xbf16>
    %64 = arith.extf %63 : vector<8x8x4xbf16> to vector<8x8x4xf32>
    %c7 = arith.constant 7 : index
    %c0_52 = arith.constant 0 : index
    %c0_53 = arith.constant 0 : index
    %65 = vector.load %arg5[%c7, %c0_52, %c0_53] : memref<9x4x128xbf16, #tpu.memory_space<vmem>>, vector<1x4x128xbf16>
    %66 = vector.shape_cast %65 : vector<1x4x128xbf16> to vector<4x128xbf16>
    %67 = vector.shape_cast %64 : vector<8x8x4xf32> to vector<64x4xf32>
    %68 = arith.truncf %67 : vector<64x4xf32> to vector<64x4xbf16>
    %cst_54 = arith.constant dense<0.000000e+00> : vector<64x128xf32>
    %69 = tpu.matmul %68, %66, %cst_54 {dimension_numbers = #tpu.dot_dimension_numbers<[1], [0], [0], [1], [0, 0, 1, 1], [], []>} : vector<64x4xbf16>, vector<4x128xbf16>, vector<64x128xf32> -> vector<64x128xf32>
    %70 = arith.addf %61, %69 : vector<64x128xf32>
    %c0_55 = arith.constant 0 : index
    %c1_56 = arith.constant 1 : index
    %c1_57 = arith.constant 1 : index
    %c0_58 = arith.constant 0 : index
    %71 = vector.load %arg1[%c0_55, %c1_56, %c1_57, %c0_58] : memref<1x9x9x4xbf16, #tpu.memory_space<vmem>>, vector<1x8x8x4xbf16>
    %72 = vector.shape_cast %71 : vector<1x8x8x4xbf16> to vector<8x8x4xbf16>
    %73 = arith.extf %72 : vector<8x8x4xbf16> to vector<8x8x4xf32>
    %c8 = arith.constant 8 : index
    %c0_59 = arith.constant 0 : index
    %c0_60 = arith.constant 0 : index
    %74 = vector.load %arg5[%c8, %c0_59, %c0_60] : memref<9x4x128xbf16, #tpu.memory_space<vmem>>, vector<1x4x128xbf16>
    %75 = vector.shape_cast %74 : vector<1x4x128xbf16> to vector<4x128xbf16>
    %76 = vector.shape_cast %73 : vector<8x8x4xf32> to vector<64x4xf32>
    %77 = arith.truncf %76 : vector<64x4xf32> to vector<64x4xbf16>
    %cst_61 = arith.constant dense<0.000000e+00> : vector<64x128xf32>
    %78 = tpu.matmul %77, %75, %cst_61 {dimension_numbers = #tpu.dot_dimension_numbers<[1], [0], [0], [1], [0, 0, 1, 1], [], []>} : vector<64x4xbf16>, vector<4x128xbf16>, vector<64x128xf32> -> vector<64x128xf32>
    %79 = arith.addf %70, %78 : vector<64x128xf32>
    %c0_62 = arith.constant 0 : index
    %c0_63 = arith.constant 0 : index
    %80 = vector.load %arg6[%c0_62, %c0_63] : memref<1x128xf32, #tpu.memory_space<vmem>>, vector<1x128xf32>
    %81 = vector.broadcast %80 : vector<1x128xf32> to vector<64x128xf32>
    %82 = arith.addf %79, %81 : vector<64x128xf32>
    %cst_64 = arith.constant 0.000000e+00 : f32
    %83 = vector.broadcast %cst_64 : f32 to vector<64x128xf32>
    %84 = arith.cmpf oge, %82, %83 : vector<64x128xf32>
    %cst_65 = arith.constant 0.00999999977 : f32
    %85 = vector.broadcast %cst_65 : f32 to vector<64x128xf32>
    %86 = arith.mulf %85, %82 : vector<64x128xf32>
    %87 = arith.select %84, %82, %86 : vector<64x128xi1>, vector<64x128xf32>
    %cst_66 = arith.constant 0.000000e+00 : f32
    %88 = vector.broadcast %cst_66 : f32 to vector<10x10x128xf32>
    %c0_67 = arith.constant 0 : index
    %c0_68 = arith.constant 0 : index
    %c0_69 = arith.constant 0 : index
    %89 = vector.load %arg10[%c0_67, %c0_68, %c0_69] : memref<10x10x128xf32, #tpu.memory_space<vmem>>, vector<10x10x128xf32>
    tpu.vector_store %arg10[%c0_67, %c0_68, %c0_69], %88 {strides = array<i32>} : memref<10x10x128xf32, #tpu.memory_space<vmem>>, vector<10x10x128xf32>,
    %90 = vector.shape_cast %87 : vector<64x128xf32> to vector<8x8x128xf32>
    %c1_70 = arith.constant 1 : index
    %c1_71 = arith.constant 1 : index
    %c0_72 = arith.constant 0 : index
    %91 = vector.load %arg10[%c1_70, %c1_71, %c0_72] : memref<10x10x128xf32, #tpu.memory_space<vmem>>, vector<8x8x128xf32>
    tpu.vector_store %arg10[%c1_70, %c1_71, %c0_72], %90 {strides = array<i32>} : memref<10x10x128xf32, #tpu.memory_space<vmem>>, vector<8x8x128xf32>,
    %c0_73 = arith.constant 0 : index
    %c0_74 = arith.constant 0 : index
    %c0_75 = arith.constant 0 : index
    %92 = vector.load %arg10[%c0_73, %c0_74, %c0_75] : memref<10x10x128xf32, #tpu.memory_space<vmem>>, vector<8x8x128xf32>
    %c0_76 = arith.constant 0 : index
    %c0_77 = arith.constant 0 : index
    %c0_78 = arith.constant 0 : index
    %93 = vector.load %arg7[%c0_76, %c0_77, %c0_78] : memref<9x128x128xbf16, #tpu.memory_space<vmem>>, vector<1x128x128xbf16>
    %94 = vector.shape_cast %93 : vector<1x128x128xbf16> to vector<128x128xbf16>
    %95 = vector.shape_cast %92 : vector<8x8x128xf32> to vector<64x128xf32>
    %96 = arith.truncf %95 : vector<64x128xf32> to vector<64x128xbf16>
    %cst_79 = arith.constant dense<0.000000e+00> : vector<64x128xf32>
    %97 = tpu.matmul %96, %94, %cst_79 {dimension_numbers = #tpu.dot_dimension_numbers<[1], [0], [0], [1], [0, 0, 1, 1], [], []>} : vector<64x128xbf16>, vector<128x128xbf16>, vector<64x128xf32> -> vector<64x128xf32>
    %c0_80 = arith.constant 0 : index
    %c1_81 = arith.constant 1 : index
    %c0_82 = arith.constant 0 : index
    %98 = vector.load %arg10[%c0_80, %c1_81, %c0_82] : memref<10x10x128xf32, #tpu.memory_space<vmem>>, vector<8x8x128xf32>
    %c1_83 = arith.constant 1 : index
    %c0_84 = arith.constant 0 : index
    %c0_85 = arith.constant 0 : index
    %99 = vector.load %arg7[%c1_83, %c0_84, %c0_85] : memref<9x128x128xbf16, #tpu.memory_space<vmem>>, vector<1x128x128xbf16>
    %100 = vector.shape_cast %99 : vector<1x128x128xbf16> to vector<128x128xbf16>
    %101 = vector.shape_cast %98 : vector<8x8x128xf32> to vector<64x128xf32>
    %102 = arith.truncf %101 : vector<64x128xf32> to vector<64x128xbf16>
    %cst_86 = arith.constant dense<0.000000e+00> : vector<64x128xf32>
    %103 = tpu.matmul %102, %100, %cst_86 {dimension_numbers = #tpu.dot_dimension_numbers<[1], [0], [0], [1], [0, 0, 1, 1], [], []>} : vector<64x128xbf16>, vector<128x128xbf16>, vector<64x128xf32> -> vector<64x128xf32>
    %104 = arith.addf %97, %103 : vector<64x128xf32>
    %c0_87 = arith.constant 0 : index
    %c2_88 = arith.constant 2 : index
    %c0_89 = arith.constant 0 : index
    %105 = vector.load %arg10[%c0_87, %c2_88, %c0_89] : memref<10x10x128xf32, #tpu.memory_space<vmem>>, vector<8x8x128xf32>
    %c2_90 = arith.constant 2 : index
    %c0_91 = arith.constant 0 : index
    %c0_92 = arith.constant 0 : index
    %106 = vector.load %arg7[%c2_90, %c0_91, %c0_92] : memref<9x128x128xbf16, #tpu.memory_space<vmem>>, vector<1x128x128xbf16>
    %107 = vector.shape_cast %106 : vector<1x128x128xbf16> to vector<128x128xbf16>
    %108 = vector.shape_cast %105 : vector<8x8x128xf32> to vector<64x128xf32>
    %109 = arith.truncf %108 : vector<64x128xf32> to vector<64x128xbf16>
    %cst_93 = arith.constant dense<0.000000e+00> : vector<64x128xf32>
    %110 = tpu.matmul %109, %107, %cst_93 {dimension_numbers = #tpu.dot_dimension_numbers<[1], [0], [0], [1], [0, 0, 1, 1], [], []>} : vector<64x128xbf16>, vector<128x128xbf16>, vector<64x128xf32> -> vector<64x128xf32>
    %111 = arith.addf %104, %110 : vector<64x128xf32>
    %c1_94 = arith.constant 1 : index
    %c0_95 = arith.constant 0 : index
    %c0_96 = arith.constant 0 : index
    %112 = vector.load %arg10[%c1_94, %c0_95, %c0_96] : memref<10x10x128xf32, #tpu.memory_space<vmem>>, vector<8x8x128xf32>
    %c3_97 = arith.constant 3 : index
    %c0_98 = arith.constant 0 : index
    %c0_99 = arith.constant 0 : index
    %113 = vector.load %arg7[%c3_97, %c0_98, %c0_99] : memref<9x128x128xbf16, #tpu.memory_space<vmem>>, vector<1x128x128xbf16>
    %114 = vector.shape_cast %113 : vector<1x128x128xbf16> to vector<128x128xbf16>
    %115 = vector.shape_cast %112 : vector<8x8x128xf32> to vector<64x128xf32>
    %116 = arith.truncf %115 : vector<64x128xf32> to vector<64x128xbf16>
    %cst_100 = arith.constant dense<0.000000e+00> : vector<64x128xf32>
    %117 = tpu.matmul %116, %114, %cst_100 {dimension_numbers = #tpu.dot_dimension_numbers<[1], [0], [0], [1], [0, 0, 1, 1], [], []>} : vector<64x128xbf16>, vector<128x128xbf16>, vector<64x128xf32> -> vector<64x128xf32>
    %118 = arith.addf %111, %117 : vector<64x128xf32>
    %c1_101 = arith.constant 1 : index
    %c1_102 = arith.constant 1 : index
    %c0_103 = arith.constant 0 : index
    %119 = vector.load %arg10[%c1_101, %c1_102, %c0_103] : memref<10x10x128xf32, #tpu.memory_space<vmem>>, vector<8x8x128xf32>
    %c4_104 = arith.constant 4 : index
    %c0_105 = arith.constant 0 : index
    %c0_106 = arith.constant 0 : index
    %120 = vector.load %arg7[%c4_104, %c0_105, %c0_106] : memref<9x128x128xbf16, #tpu.memory_space<vmem>>, vector<1x128x128xbf16>
    %121 = vector.shape_cast %120 : vector<1x128x128xbf16> to vector<128x128xbf16>
    %122 = vector.shape_cast %119 : vector<8x8x128xf32> to vector<64x128xf32>
    %123 = arith.truncf %122 : vector<64x128xf32> to vector<64x128xbf16>
    %cst_107 = arith.constant dense<0.000000e+00> : vector<64x128xf32>
    %124 = tpu.matmul %123, %121, %cst_107 {dimension_numbers = #tpu.dot_dimension_numbers<[1], [0], [0], [1], [0, 0, 1, 1], [], []>} : vector<64x128xbf16>, vector<128x128xbf16>, vector<64x128xf32> -> vector<64x128xf32>
    %125 = arith.addf %118, %124 : vector<64x128xf32>
    %c1_108 = arith.constant 1 : index
    %c2_109 = arith.constant 2 : index
    %c0_110 = arith.constant 0 : index
    %126 = vector.load %arg10[%c1_108, %c2_109, %c0_110] : memref<10x10x128xf32, #tpu.memory_space<vmem>>, vector<8x8x128xf32>
    %c5_111 = arith.constant 5 : index
    %c0_112 = arith.constant 0 : index
    %c0_113 = arith.constant 0 : index
    %127 = vector.load %arg7[%c5_111, %c0_112, %c0_113] : memref<9x128x128xbf16, #tpu.memory_space<vmem>>, vector<1x128x128xbf16>
    %128 = vector.shape_cast %127 : vector<1x128x128xbf16> to vector<128x128xbf16>
    %129 = vector.shape_cast %126 : vector<8x8x128xf32> to vector<64x128xf32>
    %130 = arith.truncf %129 : vector<64x128xf32> to vector<64x128xbf16>
    %cst_114 = arith.constant dense<0.000000e+00> : vector<64x128xf32>
    %131 = tpu.matmul %130, %128, %cst_114 {dimension_numbers = #tpu.dot_dimension_numbers<[1], [0], [0], [1], [0, 0, 1, 1], [], []>} : vector<64x128xbf16>, vector<128x128xbf16>, vector<64x128xf32> -> vector<64x128xf32>
    %132 = arith.addf %125, %131 : vector<64x128xf32>
    %c2_115 = arith.constant 2 : index
    %c0_116 = arith.constant 0 : index
    %c0_117 = arith.constant 0 : index
    %133 = vector.load %arg10[%c2_115, %c0_116, %c0_117] : memref<10x10x128xf32, #tpu.memory_space<vmem>>, vector<8x8x128xf32>
    %c6_118 = arith.constant 6 : index
    %c0_119 = arith.constant 0 : index
    %c0_120 = arith.constant 0 : index
    %134 = vector.load %arg7[%c6_118, %c0_119, %c0_120] : memref<9x128x128xbf16, #tpu.memory_space<vmem>>, vector<1x128x128xbf16>
    %135 = vector.shape_cast %134 : vector<1x128x128xbf16> to vector<128x128xbf16>
    %136 = vector.shape_cast %133 : vector<8x8x128xf32> to vector<64x128xf32>
    %137 = arith.truncf %136 : vector<64x128xf32> to vector<64x128xbf16>
    %cst_121 = arith.constant dense<0.000000e+00> : vector<64x128xf32>
    %138 = tpu.matmul %137, %135, %cst_121 {dimension_numbers = #tpu.dot_dimension_numbers<[1], [0], [0], [1], [0, 0, 1, 1], [], []>} : vector<64x128xbf16>, vector<128x128xbf16>, vector<64x128xf32> -> vector<64x128xf32>
    %139 = arith.addf %132, %138 : vector<64x128xf32>
    %c2_122 = arith.constant 2 : index
    %c1_123 = arith.constant 1 : index
    %c0_124 = arith.constant 0 : index
    %140 = vector.load %arg10[%c2_122, %c1_123, %c0_124] : memref<10x10x128xf32, #tpu.memory_space<vmem>>, vector<8x8x128xf32>
    %c7_125 = arith.constant 7 : index
    %c0_126 = arith.constant 0 : index
    %c0_127 = arith.constant 0 : index
    %141 = vector.load %arg7[%c7_125, %c0_126, %c0_127] : memref<9x128x128xbf16, #tpu.memory_space<vmem>>, vector<1x128x128xbf16>
    %142 = vector.shape_cast %141 : vector<1x128x128xbf16> to vector<128x128xbf16>
    %143 = vector.shape_cast %140 : vector<8x8x128xf32> to vector<64x128xf32>
    %144 = arith.truncf %143 : vector<64x128xf32> to vector<64x128xbf16>
    %cst_128 = arith.constant dense<0.000000e+00> : vector<64x128xf32>
    %145 = tpu.matmul %144, %142, %cst_128 {dimension_numbers = #tpu.dot_dimension_numbers<[1], [0], [0], [1], [0, 0, 1, 1], [], []>} : vector<64x128xbf16>, vector<128x128xbf16>, vector<64x128xf32> -> vector<64x128xf32>
    %146 = arith.addf %139, %145 : vector<64x128xf32>
    %c2_129 = arith.constant 2 : index
    %c2_130 = arith.constant 2 : index
    %c0_131 = arith.constant 0 : index
    %147 = vector.load %arg10[%c2_129, %c2_130, %c0_131] : memref<10x10x128xf32, #tpu.memory_space<vmem>>, vector<8x8x128xf32>
    %c8_132 = arith.constant 8 : index
    %c0_133 = arith.constant 0 : index
    %c0_134 = arith.constant 0 : index
    %148 = vector.load %arg7[%c8_132, %c0_133, %c0_134] : memref<9x128x128xbf16, #tpu.memory_space<vmem>>, vector<1x128x128xbf16>
    %149 = vector.shape_cast %148 : vector<1x128x128xbf16> to vector<128x128xbf16>
    %150 = vector.shape_cast %147 : vector<8x8x128xf32> to vector<64x128xf32>
    %151 = arith.truncf %150 : vector<64x128xf32> to vector<64x128xbf16>
    %cst_135 = arith.constant dense<0.000000e+00> : vector<64x128xf32>
    %152 = tpu.matmul %151, %149, %cst_135 {dimension_numbers = #tpu.dot_dimension_numbers<[1], [0], [0], [1], [0, 0, 1, 1], [], []>} : vector<64x128xbf16>, vector<128x128xbf16>, vector<64x128xf32> -> vector<64x128xf32>
    %153 = arith.addf %146, %152 : vector<64x128xf32>
    %c0_136 = arith.constant 0 : index
    %c0_137 = arith.constant 0 : index
    %154 = vector.load %arg8[%c0_136, %c0_137] : memref<1x128xf32, #tpu.memory_space<vmem>>, vector<1x128xf32>
    %155 = vector.broadcast %154 : vector<1x128xf32> to vector<64x128xf32>
    %156 = arith.addf %153, %155 : vector<64x128xf32>
    %cst_138 = arith.constant 0.000000e+00 : f32
    %157 = vector.broadcast %cst_138 : f32 to vector<64x128xf32>
    %158 = arith.cmpf oge, %156, %157 : vector<64x128xf32>
    %cst_139 = arith.constant 0.00999999977 : f32
    %159 = vector.broadcast %cst_139 : f32 to vector<64x128xf32>
    %160 = arith.mulf %159, %156 : vector<64x128xf32>
    %161 = arith.select %158, %156, %160 : vector<64x128xi1>, vector<64x128xf32>
    %c0_140 = arith.constant 0 : index
    %c0_141 = arith.constant 0 : index
    %c0_142 = arith.constant 0 : index
    %162 = vector.load %arg9[%c0_140, %c0_141, %c0_142] : memref<1x64x128xf32, #tpu.memory_space<vmem>>, vector<1x64x128xf32>
    %163 = vector.shape_cast %162 : vector<1x64x128xf32> to vector<64x128xf32>
    %164 = vector.shape_cast %161 : vector<64x128xf32> to vector<1x64x128xf32>
    tpu.vector_store %arg9[%c0_140, %c0_141, %c0_142], %164 {strides = array<i32>} : memref<1x64x128xf32, #tpu.memory_space<vmem>>, vector<1x64x128xf32>,
    return
  }
  func.func @transform_0(%arg0: i32) -> (i32, i32, i32, i32) {
    %c0_i32 = arith.constant 0 : i32
    %c0_i32_0 = arith.constant 0 : i32
    %c0_i32_1 = arith.constant 0 : i32
    %c0_i32_2 = arith.constant 0 : i32
    return %arg0, %c0_i32, %c0_i32_0, %c0_i32_1 : i32, i32, i32, i32
  }
  func.func @transform_1(%arg0: i32) -> (i32, i32, i32, i32) {
    %c0_i32 = arith.constant 0 : i32
    %c0_i32_0 = arith.constant 0 : i32
    %c0_i32_1 = arith.constant 0 : i32
    %c0_i32_2 = arith.constant 0 : i32
    return %arg0, %c0_i32, %c0_i32_0, %c0_i32_1 : i32, i32, i32, i32
  }
  func.func @transform_2(%arg0: i32) -> (i32, i32, i32, i32) {
    %c0_i32 = arith.constant 0 : i32
    %c0_i32_0 = arith.constant 0 : i32
    %c0_i32_1 = arith.constant 0 : i32
    %c0_i32_2 = arith.constant 0 : i32
    return %arg0, %c0_i32, %c0_i32_0, %c0_i32_1 : i32, i32, i32, i32
  }
  func.func @transform_3(%arg0: i32) -> (i32, i32, i32, i32) {
    %c0_i32 = arith.constant 0 : i32
    %c0_i32_0 = arith.constant 0 : i32
    %c0_i32_1 = arith.constant 0 : i32
    %c0_i32_2 = arith.constant 0 : i32
    return %arg0, %c0_i32, %c0_i32_0, %c0_i32_1 : i32, i32, i32, i32
  }
  func.func @transform_4(%arg0: i32) -> (i32, i32, i32) {
    %c0_i32 = arith.constant 0 : i32
    %c0_i32_0 = arith.constant 0 : i32
    %c0_i32_1 = arith.constant 0 : i32
    %c0_i32_2 = arith.constant 0 : i32
    return %c0_i32, %c0_i32_0, %c0_i32_1 : i32, i32, i32
  }
  func.func @transform_5(%arg0: i32) -> (i32, i32) {
    %c0_i32 = arith.constant 0 : i32
    %c0_i32_0 = arith.constant 0 : i32
    %c0_i32_1 = arith.constant 0 : i32
    return %c0_i32, %c0_i32_0 : i32, i32
  }
  func.func @transform_6(%arg0: i32) -> (i32, i32, i32) {
    %c0_i32 = arith.constant 0 : i32
    %c0_i32_0 = arith.constant 0 : i32
    %c0_i32_1 = arith.constant 0 : i32
    %c0_i32_2 = arith.constant 0 : i32
    return %c0_i32, %c0_i32_0, %c0_i32_1 : i32, i32, i32
  }
  func.func @transform_7(%arg0: i32) -> (i32, i32) {
    %c0_i32 = arith.constant 0 : i32
    %c0_i32_0 = arith.constant 0 : i32
    %c0_i32_1 = arith.constant 0 : i32
    return %c0_i32, %c0_i32_0 : i32, i32
  }
  func.func @transform_8(%arg0: i32) -> (i32, i32, i32) {
    %c0_i32 = arith.constant 0 : i32
    %c0_i32_0 = arith.constant 0 : i32
    %c0_i32_1 = arith.constant 0 : i32
    return %arg0, %c0_i32, %c0_i32_0 : i32, i32, i32
  }
}

</mosaic_0001>

<bundles_post_ra>
// kernel: double_conv_s2.1
= control target key start
LH: loop header
LB: loop body
LE: loop exit
PB: predicated region body
PF: predicated region fallthrough
CT: control target
= control target key end

     0   :  { %s4165_s27 = smov 0   ;;  %s4918_s0 = inlined_call_operand.vmem [shape: bf16[2,9,9,4], index: 0, kind: input, shape index: {}]   ;;  %s4919_s1 = inlined_call_operand.vmem [shape: bf16[2,9,9,4], index: 1, kind: input, shape index: {}]   ;;  %s4920_s2 = inlined_call_operand.vmem [shape: bf16[2,9,9,4], index: 2, kind: input, shape index: {}]   ;;  %s4921_s3 = inlined_call_operand.vmem [shape: bf16[2,9,9,4], index: 3, kind: input, shape index: {}]   ;;  %s4922_s4 = inlined_call_operand.vmem [shape: bf16[9,4,128], index: 4, kind: input, shape index: {}]   ;;  %s4923_s5 = inlined_call_operand.vmem [shape: f32[1,128], index: 5, kind: input, shape index: {}]   ;;  %s4924_s6 = inlined_call_operand.vmem [shape: bf16[9,128,128], index: 6, kind: input, shape index: {}]   ;;  %s4925_s7 = inlined_call_operand.vmem [shape: f32[1,128], index: 7, kind: input, shape index: {}]   ;;  %s4926_s8 = inlined_call_operand.vmem [shape: f32[2,64,128], index: 8, kind: output, shape index: {}]  }
   0x1 LB: > { %s3077_s28 = sadd.s32 4294967295, %s4117_s27   ;;  %p3081_p0 = scmp.ge.s32.totalorder %s4117_s27, 1  ;;  %s4117_s27 = sphi %s4165_s27, %s18_s27  }
   0x2   : > { %p292_p1 = scmp.lt.s32.totalorder %s4117_s27, 3 }
   0x4   : > { %p293_p2 = pnand %p3081_p0, %p292_p1 }
   0x5   : > { %v3092_v0 = vld [vmem:[%s4922_s4 + $0x2] sm:$0x3] (!%p293_p2)  ;;  %vm423_vm0 = vcmask (!%p293_p2), 1041408   ;;  %p341_p3 = scmp.lt.s32.totalorder (!%p293_p2), %s3077_s28, 1  ;;  %v383_v2 = vld [vmem:[%s4922_s4] sm:$0x3] (!%p293_p2) }
   0x6   : > { %296 = sbr.rel (%p293_p2) target bundleno = 792 (0x318), region = 52  ;;  %3996 = vmatprep.subr.msk.bf16.mxu0 (!%p293_p2), %vm423_vm0, %v3092_v0  ;;  %v425_v1 = vsel (!%p293_p2), %vm423_vm0, %v3092_v0, 0  ;;  %vm410_vm1 = vcmask (!%p293_p2), 31744   ;;  %v505_v3 = vsel (!%p293_p2), %vm423_vm0, %v383_v2, 0  ;;  %v3105_v5 = vld [vmem:[%s4922_s4 + $0x4] sm:$0x3] (!%p293_p2) }
   0x7   : > { %3547 = vmatpush3.bf16.msra.mxu0 (!%p293_p2), %v425_v1  ;;  %v672_v14 = vsel (!%p293_p2), %vm423_vm0, %v3105_v5, 0  ;;  %v3110_v32 = vld [vmem:[%s4922_s4 + $0x6] sm:$0x3] (!%p293_p2)  ;;  %vm622_vm2 = vcmask (!%p293_p2), 1046528   ;;  %v4042_v44 = vld [vmem:[%s4924_s6 + $0x88] sm:$0xff] (!%p293_p2)  }
   0x8   : > { %3997 = vmatprep.subr.msk.bf16.mxu0 (!%p293_p2), %vm423_vm0, %v383_v2  ;;  %v4040_v35 = vld [vmem:[%s4924_s6 + $0x80] sm:$0xff] (!%p293_p2)   ;;  %v4254_v47 = vld [vmem:[%s4922_s4 + $0x8] sm:$0x3] (!%p293_p2)  ;;  %v4259_v48 = vld [vmem:[%s4922_s4 + $0xa] sm:$0x3] (!%p293_p2)  ;;  %v782_v62 = vsel (!%p293_p2), %vm423_vm0, %v3110_v32, 0 }
   0x9   : > { %3684 = vmatprep.subr.bf16.mxu1 (!%p293_p2), %v4040_v35  ;;  %v4264_v49 = vld [vmem:[%s4922_s4 + $0xc] sm:$0x3] (!%p293_p2) }
   0xa   : > { %3685 = vmatpush3.bf16.msra.mxu1 (!%p293_p2), %v4040_v35 }
   0xb   : > { %3686 = vmatprep.subr.bf16.mxu1 (!%p293_p2), %v4042_v44 }
   0xd   : > { %s4928_s28 = smov (!%p341_p3, %s3077_s28), 1 }
   0xe   : > { %s4185_s11 = smul.u32 72, %s4928_s28  ;;  %3687 = vmatpush3.bf16.msra.mxu1 %v4042_v44  ;;  %s3392_s30 = sshll.u32 %s4928_s28, 6 }
   0xf   : > { %s4905_s10 = scalar_lea.vmem %s4926_s8, %s3392_s30 }
  0x10   : > { %s4191_s14 = scalar_lea.vmem %s4919_s1, %s4185_s11  ;;  %s4205_s19 = scalar_lea.vmem %s4918_s0, %s4185_s11 }
  0x11   : > { %v4015_v4 = vld [vmem:[%s4191_s14] ss:$8 sps:$4 sm:$0xff]   ;;  %v4016_v6 = vld [vmem:[%s4191_s14 + $0x10] ss:$8 sps:$4 sm:$0xff]   ;;  %v573_v11 = vld [vmem:[%s4205_s19 + $0x4] sm:$0x1]  ;;  %s4221_s22 = scalar_lea.vmem %s4920_s2, %s4185_s11  ;;  %s4244_s9 = scalar_lea.vmem %s4921_s3, %s4185_s11 }
  0x12   : > { %3548 = vmatprep.mubr.msk.bf16.mxu0 %vm410_vm1, %v4015_v4  ;;  %v4017_v7 = vld [vmem:[%s4191_s14 + $0x20] ss:$8 sps:$4 sm:$0xff]   ;;  %v4018_v8 = vld [vmem:[%s4191_s14 + $0x30] ss:$8 sps:$4 sm:$0xff]   ;;  %v575_v12 = vld [vmem:[%s4205_s19 + $0xc] sm:$0x1]  ;;  %v589_v16 = vunpack.c.l.bf16 %v573_v11 }
  0x13   : > { %3549 = vmatmul.mubr.msk.bf16.vlgmr.msra.gmra.mrb[0].mxu0 %vm410_vm1, %v4016_v6  ;;  %v4019_v9 = vld [vmem:[%s4205_s19] ss:$8 sps:$4 sm:$0xff]   ;;  %v576_v13 = vld [vmem:[%s4205_s19 + $0x10] ss:$8 sps:$4 sm:$0xff]   ;;  %v577_v18 = vld [vmem:[%s4205_s19 + $0x14] sm:$0x1]  ;;  %v591_v20 = vunpack.c.l.bf16 %v575_v12 }
  0x14   : > { %3557 = vmatpush3.bf16.msra.mxu0 %v505_v3  ;;  %3552 = vmatprep.mubr.msk.bf16.mxu0 %vm410_vm1, %v4017_v7  ;;  %v572_v10 = vld [vmem:[%s4205_s19] ss:$8 sps:$4 sm:$0xff]   ;;  %v4020_v19 = vld [vmem:[%s4205_s19 + $0x10] ss:$8 sps:$4 sm:$0xff]   ;;  %v579_v21 = vld [vmem:[%s4205_s19 + $0x1c] sm:$0x1]  ;;  %v592_v23 = vunpack.c.l.bf16 %v576_v13  ;;  %v593_v25 = vunpack.c.l.bf16 %v577_v18  ;;  %v594_v26 = vunpack.c.h.bf16 %v576_v13 }
  0x15   : > { %3998 = vmatprep.subr.msk.bf16.mxu0 %vm423_vm0, %v3105_v5  ;;  %v588_v15 = vunpack.c.l.bf16 %v572_v10  ;;  %v590_v17 = vunpack.c.h.bf16 %v572_v10  ;;  %v4021_v22 = vld [vmem:[%s4205_s19 + $0x20] ss:$8 sps:$4 sm:$0xff]   ;;  %v581_v27 = vld [vmem:[%s4205_s19 + $0x24] sm:$0x1]  ;;  %v583_v28 = vld [vmem:[%s4205_s19 + $0x2c] sm:$0x1]  ;;  %v595_v33 = vunpack.c.l.bf16 %v579_v21 }
  0x16   : > { %v580_v24 = vld [vmem:[%s4205_s19 + $0x20] ss:$8 sps:$4 sm:$0xff]   ;;  %v624_v30 = vrot.slane %v589_v16, 1  ;;  %v627_v34 = vrot.slane %v591_v20, 1  ;;  %v629_v36 = vrot.slane %v592_v23, 1  ;;  %v597_v38 = vunpack.c.l.bf16 %v581_v27  ;;  %v4044_v23 = vld [vmem:[%s4924_s6 + $0x90] sm:$0xff]  }
  0x17   : > { %v623_v29 = vrot.slane %v588_v15, 1  ;;  %v626_v31 = vrot.slane %v590_v17, 1  ;;  %v596_v37 = vunpack.c.l.bf16 %v580_v24  ;;  %v584_v39 = vld [vmem:[%s4205_s19 + $0x30] ss:$8 sps:$4 sm:$0xff]   ;;  %v585_v40 = vld [vmem:[%s4205_s19 + $0x34] sm:$0x1]  ;;  %v598_v42 = vunpack.c.h.bf16 %v580_v24  ;;  %3688 = vmatprep.subr.bf16.mxu1 %v4044_v23 }
  0x18   : > { %v630_v41 = vrot.slane %v593_v25, 1  ;;  %v599_v43 = vunpack.c.l.bf16 %v583_v28  ;;  %v632_v45 = vrot.slane %v594_v26, 1  ;;  %v633_v46 = vrot.slane %v595_v33, 1  ;;  %v587_v52 = vld [vmem:[%s4205_s19 + $0x3c] sm:$0x1]  ;;  %3689 = vmatpush3.bf16.msra.mxu1 %v4044_v23 }
  0x19   : > { %v625_v50 = vsel %vm622_vm2, %v623_v29, %v624_v30  ;;  %v628_v51 = vsel %vm622_vm2, %v626_v31, %v627_v34  ;;  %v635_v53 = vrot.slane %v596_v37, 1  ;;  %v636_v54 = vrot.slane %v597_v38, 1  ;;  %v4022_v57 = vld [vmem:[%s4205_s19 + $0x30] ss:$8 sps:$4 sm:$0xff]   ;;  %v967_v0 = vld [vmem:[%s4221_s22] ss:$8 sps:$4 sm:$0xff]  }
  0x1a   : > { %v600_v55 = vunpack.c.l.bf16 %v584_v39  ;;  %v601_v56 = vunpack.c.l.bf16 %v585_v40  ;;  %v638_v58 = vrot.slane %v598_v42, 1  ;;  %v639_v59 = vrot.slane %v599_v43, 1  ;;  %v968_v1 = vld [vmem:[%s4221_s22 + $0x4] sm:$0x1]  ;;  %v970_v5 = vld [vmem:[%s4221_s22 + $0xc] sm:$0x1] }
  0x1b   : > { %3553 = vmatmul.mubr.msk.bf16.gmra.mrb[4].mxu0 %vm410_vm1, %v4018_v8  ;;  %v602_v60 = vunpack.c.h.bf16 %v584_v39  ;;  %v655_v61 = vpack.c.bf16 %v628_v51, %v625_v50  ;;  %v603_v63 = vunpack.c.l.bf16 %v587_v52  ;;  %v631_v2 = vsel %vm622_vm2, %v629_v36, %v630_v41  ;;  %v971_v11 = vld [vmem:[%s4221_s22 + $0x10] ss:$8 sps:$4 sm:$0xff]   ;;  %v972_v12 = vld [vmem:[%s4221_s22 + $0x14] sm:$0x1]  ;;  %v974_v17 = vld [vmem:[%s4221_s22 + $0x1c] sm:$0x1] }
  0x1c   : > { %3558 = vmatprep.mubr.msk.bf16.mxu0 %vm410_vm1, %v4019_v9  ;;  %v4277_v3 = vsel %vm423_vm0, %v4254_v47, 0  ;;  %v4281_v4 = vsel %vm423_vm0, %v4259_v48, 0  ;;  %v4286_v6 = vsel %vm423_vm0, %v4264_v49, 0  ;;  %v634_v7 = vsel %vm622_vm2, %v632_v45, %v633_v46  ;;  %v975_v21 = vld [vmem:[%s4221_s22 + $0x20] ss:$8 sps:$4 sm:$0xff]   ;;  %v4046_v51 = vld [vmem:[%s4924_s6 + $0x98] sm:$0xff]  }
  0x1d   : > { %v637_v8 = vsel %vm622_vm2, %v635_v53, %v636_v54  ;;  %v641_v9 = vrot.slane %v600_v55, 1  ;;  %v642_v10 = vrot.slane %v601_v56, 1  ;;  %v640_v13 = vsel %vm622_vm2, %v638_v58, %v639_v59  ;;  %v978_v26 = vld [vmem:[%s4221_s22 + $0x2c] sm:$0x1]  ;;  %v979_v30 = vld [vmem:[%s4221_s22 + $0x30] ss:$8 sps:$4 sm:$0xff]   ;;  %3690 = vmatprep.subr.bf16.mxu1 %v4046_v51 }
  0x1e   : > { %v983_v15 = vunpack.c.l.bf16 %v967_v0  ;;  %v984_v16 = vunpack.c.l.bf16 %v968_v1  ;;  %v645_v18 = vrot.slane %v603_v63, 1  ;;  %v986_v20 = vunpack.c.l.bf16 %v970_v5  ;;  %v980_v35 = vld [vmem:[%s4221_s22 + $0x34] sm:$0x1]  ;;  %v4319_v45 = vld [vmem:[%s4221_s22 + $0x3c] sm:$0x1]  ;;  %3691 = vmatpush3.bf16.msra.mxu1 %v4046_v51 }
  0x1f   : > { %v987_v24 = vunpack.c.l.bf16 %v971_v11  ;;  %v988_v25 = vunpack.c.l.bf16 %v972_v12  ;;  %v656_v27 = vpack.c.bf16 %v634_v7, %v631_v2  ;;  %v657_v28 = vpack.c.bf16 %v640_v13, %v637_v8  ;;  %v3167_v63 = vld [vmem:[%s4205_s19 + $0x8] ss:$8 sps:$4 sm:$0xff]   ;;  %v3168_v2 = vld [vmem:[%s4205_s19 + $0xc] sm:$0x1]  ;;  %v3171_v8 = vld [vmem:[%s4205_s19 + $0x18] ss:$8 sps:$4 sm:$0xff]  }
  0x20   : > { %v989_v29 = vunpack.c.h.bf16 %v971_v11  ;;  %v4303_v31 = vrot.slane %v983_v15, 1  ;;  %v990_v33 = vunpack.c.l.bf16 %v974_v17  ;;  %v991_v34 = vunpack.c.l.bf16 %v975_v21  ;;  %v3172_v11 = vld [vmem:[%s4205_s19 + $0x1c] sm:$0x1]  ;;  %v3174_v12 = vld [vmem:[%s4205_s19 + $0x24] sm:$0x1] }
  0x21   : > { %v4310_v37 = vrot.slane %v986_v20, 1  ;;  %v993_v39 = vunpack.c.h.bf16 %v975_v21  ;;  %v4312_v40 = vrot.slane %v987_v24, 1  ;;  %v4314_v41 = vrot.slane %v988_v25, 1  ;;  %v3175_v15 = vld [vmem:[%s4205_s19 + $0x28] ss:$8 sps:$4 sm:$0xff]  }
  0x22   : > { %v994_v42 = vunpack.c.l.bf16 %v978_v26  ;;  %v995_v43 = vunpack.c.l.bf16 %v979_v30  ;;  %v4316_v44 = vrot.slane %v989_v29, 1  ;;  %v996_v46 = vunpack.c.l.bf16 %v980_v35  ;;  %v3176_v20 = vld [vmem:[%s4205_s19 + $0x2c] sm:$0x1]  ;;  %v3178_v21 = vld [vmem:[%s4205_s19 + $0x34] sm:$0x1] }
  0x23   : > { %3559 = vmatmul.mubr.msk.bf16.vlgmr.msra.gmra.mrb[0].mxu0 %vm410_vm1, %v4020_v19  ;;  %v985_v19 = vunpack.c.h.bf16 %v967_v0  ;;  %v997_v50 = vunpack.c.h.bf16 %v979_v30  ;;  %v4325_v52 = vrot.slane %v990_v33, 1  ;;  %v4327_v53 = vrot.slane %v991_v34, 1  ;;  %v3179_v26 = vld [vmem:[%s4205_s19 + $0x38] ss:$8 sps:$4 sm:$0xff]   ;;  %v3180_v33 = vld [vmem:[%s4205_s19 + $0x3c] sm:$0x1] }
  0x24   : > { %3567 = vmatpush3.bf16.msra.mxu0 %v672_v14  ;;  %3562 = vmatprep.mubr.msk.bf16.mxu0 %vm410_vm1, %v4021_v22  ;;  %v644_v14 = vrot.slane %v602_v60, 1  ;;  %v976_v22 = vld [vmem:[%s4221_s22 + $0x24] sm:$0x1]  ;;  %v643_v54 = vsel %vm622_vm2, %v641_v9, %v642_v10  ;;  %v4338_v58 = vrot.slane %v994_v42, 1  ;;  %v4340_v59 = vrot.slane %v995_v43, 1 }
  0x25   : > { %3999 = vmatprep.subr.msk.bf16.mxu0 %vm423_vm0, %v3110_v32  ;;  %v4305_v32 = vrot.slane %v984_v16, 1  ;;  %v4308_v36 = vrot.slane %v985_v19, 1  ;;  %v992_v38 = vunpack.c.l.bf16 %v976_v22  ;;  %v4023_v60 = vld [vmem:[%s4221_s22] ss:$8 sps:$4 sm:$0xff]   ;;  %v998_v1 = vunpack.c.l.bf16 %v4319_v45  ;;  %v3182_v34 = vld [vmem:[%s4205_s19 + $0x44] sm:$0x1] }
  0x26   : > { %v646_v55 = vsel %vm622_vm2, %v644_v14, %v645_v18  ;;  %v1379_v5 = vunpack.c.l.bf16 %v3167_v63  ;;  %v1381_v7 = vunpack.c.h.bf16 %v3167_v63  ;;  %v1380_v9 = vunpack.c.l.bf16 %v3168_v2  ;;  %v4024_v43 = vld [vmem:[%s4221_s22 + $0x10] ss:$8 sps:$4 sm:$0xff]  }
  0x27   : > { %v4332_v56 = vrot.slane %v992_v38, 1  ;;  %v658_v0 = vpack.c.bf16 %v646_v55, %v643_v54  ;;  %v1383_v13 = vunpack.c.l.bf16 %v3171_v8  ;;  %v1385_v14 = vunpack.c.h.bf16 %v3171_v8  ;;  %v4025_v54 = vld [vmem:[%s4221_s22 + $0x20] ss:$8 sps:$4 sm:$0xff]  }
  0x28   : > { %v1413_v16 = vrot.slane %v1379_v5, 1  ;;  %v1416_v17 = vrot.slane %v1381_v7, 1  ;;  %v1384_v18 = vunpack.c.l.bf16 %v3172_v11  ;;  %v1386_v19 = vunpack.c.l.bf16 %v3174_v12 }
  0x29   : > { %v1414_v22 = vrot.slane %v1380_v9, 1  ;;  %v1419_v24 = vrot.slane %v1383_v13, 1  ;;  %v1422_v25 = vrot.slane %v1385_v14, 1  ;;  %v1387_v29 = vunpack.c.l.bf16 %v3175_v15 }
  0x2a   : > { %v1388_v30 = vunpack.c.l.bf16 %v3176_v20  ;;  %v1390_v42 = vunpack.c.l.bf16 %v3178_v21  ;;  %v1391_v2 = vunpack.c.l.bf16 %v3179_v26  ;;  %v1393_v5 = vunpack.c.h.bf16 %v3179_v26  ;;  %v4028_v20 = vld [vmem:[%s4244_s9 + $0x10] ss:$8 sps:$4 sm:$0xff]   ;;  %v4029_v21 = vld [vmem:[%s4244_s9 + $0x20] ss:$8 sps:$4 sm:$0xff]  }
  0x2b   : > { %3563 = vmatmul.mubr.msk.bf16.gmra.mrb[4].mxu0 %vm410_vm1, %v4022_v57  ;;  %v4334_v57 = vrot.slane %v993_v39, 1  ;;  %v4363_v35 = vsel %vm622_vm2, %v1413_v16, %v1414_v22  ;;  %v1389_v39 = vunpack.c.h.bf16 %v3175_v15  ;;  %v1425_v51 = vrot.slane %v1387_v29, 1  ;;  %v4039_v26 = vld [vmem:[%s4924_s6 + $0x40] sm:$0xff]   ;;  %v4043_v29 = vld [vmem:[%s4924_s6 + $0x50] sm:$0xff]  }
  0x2c   : > { %3568 = vmatprep.mubr.msk.bf16.mxu0 %vm410_vm1, %v655_v61  ;;  %v4343_v61 = vrot.slane %v996_v46, 1  ;;  %v1394_v7 = vunpack.c.l.bf16 %v3182_v34  ;;  %v1431_v11 = vrot.slane %v1391_v2, 1  ;;  %v1434_v13 = vrot.slane %v1393_v5, 1  ;;  %v4049_v34 = vld [vmem:[%s4924_s6 + $0x68] sm:$0xff]  }
  0x2d   : > { %v1428_v63 = vrot.slane %v1389_v39, 1  ;;  %v1039_v14 = vrot.slane %v998_v1, 1  ;;  %v1022_v22 = vsel %vm622_vm2, %v4308_v36, %v4310_v37  ;;  %v4051_v39 = vld [vmem:[%s4924_s6 + $0x70] sm:$0xff]  }
  0x2e   : > { %v1435_v15 = vrot.slane %v1394_v7, 1 }
  0x33   : > { %3569 = vmatmul.mubr.msk.bf16.vlgmr.msra.gmra.mrb[0].mxu0 %vm410_vm1, %v656_v27  ;;  %v1420_v27 = vrot.slane %v1384_v18, 1  ;;  %v4026_v18 = vld [vmem:[%s4221_s22 + $0x30] ss:$8 sps:$4 sm:$0xff]  }
  0x34   : > { %3577 = vmatpush3.bf16.msra.mxu0 %v782_v62  ;;  %3572 = vmatprep.mubr.msk.bf16.mxu0 %vm410_vm1, %v657_v28  ;;  %v4345_v62 = vrot.slane %v997_v50, 1  ;;  %v1423_v28 = vrot.slane %v1386_v19, 1  ;;  %v4027_v19 = vld [vmem:[%s4244_s9] ss:$8 sps:$4 sm:$0xff]  }
  0x35   : > { %4000 = vmatprep.subr.msk.bf16.mxu0 %vm423_vm0, %v4254_v47  ;;  %v3170_v47 = vld [vmem:[%s4205_s19 + $0x14] sm:$0x1]  ;;  %v4372_v46 = vsel %vm622_vm2, %v1419_v24, %v1420_v27  ;;  %v4037_v24 = vld [vmem:[%s4191_s14 + $0x28] ss:$8 sps:$4 sm:$0xff]   ;;  %v4038_v27 = vld [vmem:[%s4191_s14 + $0x38] ss:$8 sps:$4 sm:$0xff]  }
  0x36   : > { %v1382_v10 = vunpack.c.l.bf16 %v3170_v47  ;;  %v4375_v50 = vsel %vm622_vm2, %v1422_v25, %v1423_v28  ;;  %v1392_v47 = vunpack.c.l.bf16 %v3180_v33  ;;  %v4041_v28 = vld [vmem:[%s4924_s6 + $0x48] sm:$0xff]   ;;  %v4047_v33 = vld [vmem:[%s4924_s6 + $0x60] sm:$0xff]  }
  0x37   : > { %v1446_v55 = vpack.c.bf16 %v4375_v50, %v4372_v46  ;;  %v4055_v46 = vld [vmem:[%s4924_s6] sm:$0xff]   ;;  %v4054_v50 = vld [vmem:[%s4924_s6 + $0xb8] sm:$0xff]  }
  0x38   : > { %v1417_v23 = vrot.slane %v1382_v10, 1  ;;  %v1432_v12 = vrot.slane %v1392_v47, 1 }
  0x3a   : > { %v4366_v38 = vsel %vm622_vm2, %v1416_v17, %v1417_v23  ;;  %v4390_v16 = vsel %vm622_vm2, %v1431_v11, %v1432_v12  ;;  %v4395_v17 = vsel %vm622_vm2, %v1434_v13, %v1435_v15 }
  0x3b   : > { %3573 = vmatmul.mubr.msk.bf16.gmra.mrb[4].mxu0 %vm410_vm1, %v658_v0  ;;  %v1445_v45 = vpack.c.bf16 %v4366_v38, %v4363_v35  ;;  %v1429_v0 = vrot.slane %v1390_v42, 1  ;;  %v1448_v1 = vpack.c.bf16 %v4395_v17, %v4390_v16  ;;  %v4119_v35 = vmov 0.0   ;;  %v4048_v38 = vld [vmem:[%s4924_s6 + $0xa0] sm:$0xff]   ;;  %v4050_v42 = vld [vmem:[%s4924_s6 + $0xa8] sm:$0xff]  }
  0x3c   : > { %3578 = vmatprep.mubr.msk.bf16.mxu0 %vm410_vm1, %v4023_v60  ;;  %v1426_v60 = vrot.slane %v1388_v30, 1  ;;  %v4045_v30 = vld [vmem:[%s4924_s6 + $0x58] sm:$0xff]   ;;  %1582 = vst [vmem:[#allocation2 + $0x30] sm:$0xff] %v4119_v35  ;;  %1583 = vst [vmem:[#allocation2 + $0x38] sm:$0x3] %v4119_v35  ;;  %3692 = vmatprep.subr.bf16.mxu1 %v4048_v38 }
  0x3d   : > { %v4384_v9 = vsel %vm622_vm2, %v1428_v63, %v1429_v0  ;;  %1576 = vst [vmem:[#allocation2] sm:$0xff] %v4119_v35  ;;  %1577 = vst [vmem:[#allocation2 + $0x8] sm:$0x3] %v4119_v35  ;;  %3693 = vmatpush3.bf16.msra.mxu1 %v4048_v38 }
  0x3e   : > { %v4381_v8 = vsel %vm622_vm2, %v1425_v51, %v1426_v60  ;;  %1578 = vst [vmem:[#allocation2 + $0x10] sm:$0xff] %v4119_v35  ;;  %1579 = vst [vmem:[#allocation2 + $0x18] sm:$0x3] %v4119_v35  ;;  %3694 = vmatprep.subr.bf16.mxu1 %v4050_v42  ;;  %v4546_v51 = vld [vmem:[%s4924_s6 + $0xc0] sm:$0xff]  }
  0x3f   : > { %v1447_v10 = vpack.c.bf16 %v4384_v9, %v4381_v8  ;;  %1580 = vst [vmem:[#allocation2 + $0x20] sm:$0xff] %v4119_v35  ;;  %1581 = vst [vmem:[#allocation2 + $0x28] sm:$0x3] %v4119_v35 }
  0x40   : > { %1584 = vst [vmem:[#allocation2 + $0x40] sm:$0xff] %v4119_v35  ;;  %1585 = vst [vmem:[#allocation2 + $0x48] sm:$0x3] %v4119_v35 }
  0x41   : > { %1586 = vst [vmem:[#allocation2 + $0x50] sm:$0xff] %v4119_v35  ;;  %1587 = vst [vmem:[#allocation2 + $0x58] sm:$0x3] %v4119_v35  ;;  %3695 = vmatpush3.bf16.msra.mxu1 %v4050_v42  ;;  %v4060_v42 = vld [vmem:[%s4924_s6 + $0xd0] sm:$0xff]  }
  0x42   : > { %1588 = vst [vmem:[#allocation2 + $0x60] sm:$0xff] %v4119_v35  ;;  %1589 = vst [vmem:[#allocation2 + $0x68] sm:$0x3] %v4119_v35 }
  0x43   : > { %3579 = vmatmul.mubr.msk.bf16.vlgmr.msra.gmra.mrb[0].mxu0 %vm410_vm1, %v4024_v43  ;;  %1590 = vst [vmem:[#allocation2 + $0x70] sm:$0xff] %v4119_v35  ;;  %1591 = vst [vmem:[#allocation2 + $0x78] sm:$0x3] %v4119_v35  ;;  %v4053_v43 = vld [vmem:[%s4924_s6 + $0x78] sm:$0xff]  }
  0x44   : > { %3587 = vmatpush3.bf16.msra.mxu0 %v4277_v3  ;;  %3582 = vmatprep.mubr.msk.bf16.mxu0 %vm410_vm1, %v4025_v54  ;;  %v4030_v3 = vld [vmem:[%s4244_s9 + $0x30] ss:$8 sps:$4 sm:$0xff]   ;;  %1592 = vst [vmem:[#allocation2 + $0x80] sm:$0xff] %v4119_v35  ;;  %1593 = vst [vmem:[#allocation2 + $0x88] sm:$0x3] %v4119_v35 }
  0x45   : > { %4001 = vmatprep.subr.msk.bf16.mxu0 %vm423_vm0, %v4259_v48  ;;  %v1019_v48 = vsel %vm622_vm2, %v4303_v31, %v4305_v32  ;;  %v1028_v31 = vsel %vm622_vm2, %v4316_v44, %v4325_v52  ;;  %v1031_v32 = vsel %vm622_vm2, %v4327_v53, %v4332_v56  ;;  %v1040_v44 = vsel %vm622_vm2, %v4345_v62, %v1039_v14  ;;  %v4031_v52 = vld [vmem:[%s4205_s19 + $0x8] ss:$8 sps:$4 sm:$0xff]   ;;  %v4036_v62 = vld [vmem:[%s4191_s14 + $0x18] ss:$8 sps:$4 sm:$0xff]  }
  0x46   : > { %v1049_v23 = vpack.c.bf16 %v1022_v22, %v1019_v48  ;;  %v4033_v56 = vld [vmem:[%s4205_s19 + $0x28] ss:$8 sps:$4 sm:$0xff]   ;;  %1594 = vst [vmem:[#allocation2 + $0x90] sm:$0xff] %v4119_v35  ;;  %1595 = vst [vmem:[#allocation2 + $0x98] sm:$0x3] %v4119_v35 }
  0x47   : > { %v3188_v54 = vld [vmem:[%s4923_s5] ss:$0 sm:$0xff] }
  0x4b   : > { %3583 = vmatmul.mubr.msk.bf16.gmra.mrb[4].mxu0 %vm410_vm1, %v4026_v18 }
  0x4c   : > { %3588 = vmatprep.mubr.msk.bf16.mxu0 %vm410_vm1, %v4027_v19 }
  0x53   : > { %3589 = vmatmul.mubr.msk.bf16.vlgmr.msra.gmra.mrb[0].mxu0 %vm410_vm1, %v4028_v20 }
  0x54   : > { %3597 = vmatpush3.bf16.msra.mxu0 %v4281_v4  ;;  %3592 = vmatprep.mubr.msk.bf16.mxu0 %vm410_vm1, %v4029_v21  ;;  %v1025_v4 = vsel %vm622_vm2, %v4312_v40, %v4314_v41  ;;  %v3158_v40 = vld [vmem:[%s4922_s4 + $0xe] sm:$0x3]  ;;  %v1037_v41 = vsel %vm622_vm2, %v4340_v59, %v4343_v61  ;;  %v4034_v59 = vld [vmem:[%s4205_s19 + $0x38] ss:$8 sps:$4 sm:$0xff]   ;;  %v4035_v61 = vld [vmem:[%s4191_s14 + $0x8] ss:$8 sps:$4 sm:$0xff]  }
  0x55   : > { %4002 = vmatprep.subr.msk.bf16.mxu0 %vm423_vm0, %v4264_v49  ;;  %v1034_v49 = vsel %vm622_vm2, %v4334_v57, %v4338_v58  ;;  %v1050_v36 = vpack.c.bf16 %v1028_v31, %v1025_v4  ;;  %v1052_v53 = vpack.c.bf16 %v1040_v44, %v1037_v41  ;;  %v1288_v57 = vsel %vm423_vm0, %v3158_v40, 0  ;;  %v3183_v58 = vld [vmem:[%s4922_s4 + $0x10] sm:$0x3] }
  0x56   : > { %v1051_v37 = vpack.c.bf16 %v1034_v49, %v1031_v32  ;;  %v1462_v25 = vsel %vm423_vm0, %v3183_v58, 0 }
  0x5b   : > { %3593 = vmatmul.mubr.msk.bf16.gmra.mrb[4].mxu0 %vm410_vm1, %v4030_v3  ;;  %v4057_v3 = vld [vmem:[%s4924_s6 + $0x8] sm:$0xff]  }
  0x5c   : > { %3598 = vmatprep.mubr.msk.bf16.mxu0 %vm410_vm1, %v1049_v23 }
  0x63   : > { %3599 = vmatmul.mubr.msk.bf16.vlgmr.msra.gmra.mrb[0].mxu0 %vm410_vm1, %v1050_v36 }
  0x64   : > { %3607 = vmatpush3.bf16.msra.mxu0 %v4286_v6  ;;  %3602 = vmatprep.mubr.msk.bf16.mxu0 %vm410_vm1, %v1051_v37  ;;  %v4032_v6 = vld [vmem:[%s4205_s19 + $0x18] ss:$8 sps:$4 sm:$0xff]  }
  0x65   : > { %4003 = vmatprep.subr.msk.bf16.mxu0 %vm423_vm0, %v3158_v40  ;;  %v1888_v37 = vld [vmem:[#allocation2 + $0x2] sm:$0xff] }
  0x6b   : > { %3603 = vmatmul.mubr.msk.bf16.gmra.mrb[4].mxu0 %vm410_vm1, %v1052_v53 }
  0x6c   : > { %3608 = vmatprep.mubr.msk.bf16.mxu0 %vm410_vm1, %v4031_v52 }
  0x73   : > { %3609 = vmatmul.mubr.msk.bf16.vlgmr.msra.gmra.mrb[0].mxu0 %vm410_vm1, %v4032_v6  ;;  %v4059_v6 = vld [vmem:[%s4924_s6 + $0x10] sm:$0xff]  }
  0x74   : > { %3617 = vmatpush3.bf16.msra.mxu0 %v1288_v57  ;;  %3612 = vmatprep.mubr.msk.bf16.mxu0 %vm410_vm1, %v4033_v56 }
  0x75   : > { %4004 = vmatprep.subr.msk.bf16.mxu0 %vm423_vm0, %v3183_v58 }
  0x7b   : > { %3613 = vmatmul.mubr.msk.bf16.gmra.mrb[4].mxu0 %vm410_vm1, %v4034_v59 }
  0x7c   : > { %3618 = vmatprep.mubr.msk.bf16.mxu0 %vm410_vm1, %v4035_v61 }
  0x83   : > { %3619 = vmatmul.mubr.msk.bf16.vlgmr.msra.gmra.mrb[0].mxu0 %vm410_vm1, %v4036_v62 }
  0x84   : > { %3627 = vmatpush3.bf16.msra.mxu0 %v1462_v25  ;;  %3622 = vmatprep.mubr.msk.bf16.mxu0 %vm410_vm1, %v4037_v24 }
  0x85   : > { %3636 = vmatprep.subr.bf16.mxu0 %v4039_v26 }
  0x8b   : > { %3623 = vmatmul.mubr.msk.bf16.gmra.mrb[4].mxu0 %vm410_vm1, %v4038_v27 }
  0x8c   : > { %3628 = vmatprep.mubr.msk.bf16.mxu0 %vm410_vm1, %v1445_v45  ;;  %v4052_v45 = vld [vmem:[%s4924_s6 + $0xb0] sm:$0xff]  }
  0x8d   : > { %3696 = vmatprep.subr.bf16.mxu1 %v4052_v45 }
  0x8e   : > { %3697 = vmatpush3.bf16.msra.mxu1 %v4052_v45  ;;  %v4063_v45 = vld [vmem:[%s4924_s6 + $0x20] sm:$0xff]  }
  0x8f   : > { %3698 = vmatprep.subr.bf16.mxu1 %v4054_v50 }
  0x92   : > { %3699 = vmatpush3.bf16.msra.mxu1 %v4054_v50 }
  0x93   : > { %3629 = vmatmul.mubr.msk.bf16.vlgmr.msra.gmra.mrb[0].mxu0 %vm410_vm1, %v1446_v55  ;;  %3708 = vmatprep.subr.bf16.mxu1 %v4546_v51 }
  0x94   : > { %3632 = vmatprep.mubr.msk.bf16.mxu0 %vm410_vm1, %v1447_v10  ;;  %3637 = vmatpush3.bf16.msra.mxu0 %v4039_v26  ;;  %v1633_v10 = vld [vmem:[#allocation2 + $0x1] sm:$0xff] }
  0x95   : > { %3638 = vmatprep.subr.bf16.mxu0 %v4041_v28 }
  0x98   : > { %3639 = vmatpush3.bf16.msra.mxu0 %v4041_v28 }
  0x99   : > { %3640 = vmatprep.subr.bf16.mxu0 %v4043_v29 }
  0x9b   : > { %3633 = vmatmul.mubr.msk.bf16.gmra.mrb[4].mxu0 %vm410_vm1, %v1448_v1 }
  0x9c   : > { %3641 = vmatpush3.bf16.msra.mxu0 %v4043_v29  ;;  %v4058_v29 = vld [vmem:[%s4924_s6 + $0xc8] sm:$0xff]  }
  0x9d   : > { %3642 = vmatprep.subr.bf16.mxu0 %v4045_v30 }
  0xa0   : > { %3643 = vmatpush3.bf16.msra.mxu0 %v4045_v30 }
  0xa1   : > { %3644 = vmatprep.subr.bf16.mxu0 %v4047_v33 }
  0xa4   : > { %3645 = vmatpush3.bf16.msra.mxu0 %v4047_v33  ;;  %v4061_v33 = vld [vmem:[%s4924_s6 + $0x18] sm:$0xff]  }
  0xa5   : > { %3646 = vmatprep.subr.bf16.mxu0 %v4049_v34 }
  0xa8   : > { %3647 = vmatpush3.bf16.msra.mxu0 %v4049_v34 }
  0xa9   : > { %3648 = vmatprep.subr.bf16.mxu0 %v4051_v39 }
  0xac   : > { %3649 = vmatpush3.bf16.msra.mxu0 %v4051_v39 }
  0xad   : > { %3650 = vmatprep.subr.bf16.mxu0 %v4053_v43 }
  0xb0   : > { %3651 = vmatpush3.bf16.msra.mxu0 %v4053_v43 }
  0xb1   : > { %3660 = vmatprep.subr.bf16.mxu0 %v4055_v46 }
 0x166   : > { %v3630_v55 = vpop.f32.mrb[0].mxu0 }
 0x167   : > { %v1546_v60 = vadd.f32 %v3630_v55, %v3188_v54  ;;  %v1498_v63 = vpop.f32.mrb[1].mxu0 }
 0x168   : > { %v1544_v0 = vadd.f32 %v3188_v54, %v1498_v63  ;;  %v3631_v2 = vpop.f32.mrb[2].mxu0 }
 0x169   : > { %vm1554_vm3 = vcmp.ge.f32.partialorder %v1546_v60, 0.0  ;;  %v1562_v47 = vmul.f32 0.01, %v1546_v60  ;;  %v1547_v5 = vadd.f32 %v3631_v2, %v3188_v54  ;;  %v1501_v7 = vpop.f32.mrb[3].mxu0 }
 0x16a   : > { %vm1552_vm4 = vcmp.ge.f32.partialorder %v1544_v0, 0.0  ;;  %v1560_v8 = vmul.f32 0.01, %v1544_v0  ;;  %v1545_v9 = vadd.f32 %v3188_v54, %v1501_v7  ;;  %v4066_v7 = vld [vmem:[%s4924_s6 + $0xe8] sm:$0xff]  }
 0x16b   : > { %v4552_v11 = vsel %vm1554_vm3, %v1546_v60, %v1562_v47  ;;  %vm1555_vm5 = vcmp.ge.f32.partialorder %v1547_v5, 0.0  ;;  %v1563_v12 = vmul.f32 0.01, %v1547_v5  ;;  %v4062_v60 = vld [vmem:[%s4924_s6 + $0xd8] sm:$0xff]   ;;  %v4064_v47 = vld [vmem:[%s4924_s6 + $0xe0] sm:$0xff]  }
 0x16c   : > { %1599 = vst [vmem:[#allocation2 + $0x31] sm:$0xff] %v4552_v11  ;;  %v4555_v13 = vsel %vm1552_vm4, %v1544_v0, %v1560_v8  ;;  %vm1553_vm6 = vcmp.ge.f32.partialorder %v1545_v9, 0.0  ;;  %v1561_v14 = vmul.f32 0.01, %v1545_v9  ;;  %v4065_v0 = vld [vmem:[%s4924_s6 + $0x28] sm:$0xff]   ;;  %v4069_v8 = vld [vmem:[%s4924_s6 + $0x38] sm:$0xff]  }
 0x16d   : > { %1597 = vst [vmem:[#allocation2 + $0x11] sm:$0xff] %v4555_v13  ;;  %v4558_v15 = vsel %vm1555_vm5, %v1547_v5, %v1563_v12  ;;  %v1658_v16 = vpack.c.bf16 %v4555_v13, %v1633_v10  ;;  %v4067_v5 = vld [vmem:[%s4924_s6 + $0x30] sm:$0xff]   ;;  %v4680_v10 = vld [vmem:[%s4924_s6 + $0x200] sm:$0xff]  }
 0x16e   : > { %1600 = vst [vmem:[#allocation2 + $0x41] sm:$0xff] %v4558_v15  ;;  %v4562_v17 = vsel %vm1553_vm6, %v1545_v9, %v1561_v14  ;;  %v3634_v18 = vpop.f32.mrb[4].mxu0  ;;  %v2214_v1 = vpack.c.bf16 %v4558_v15, %v4552_v11  ;;  %v4068_v9 = vld [vmem:[%s4924_s6 + $0xf0] sm:$0xff]   ;;  %v4070_v14 = vld [vmem:[%s4924_s6 + $0xf8] sm:$0xff]  }
 0x16f   : > { %1598 = vst [vmem:[#allocation2 + $0x21] sm:$0xff] %v4562_v17  ;;  %v1550_v19 = vadd.f32 %v3634_v18, %v3188_v54  ;;  %v1514_v20 = vpop.f32.mrb[5].mxu0  ;;  %3652 = vmatprep.mubr.bf16.mxu0 %v1658_v16  ;;  %v4569_v21 = vpack.c.bf16 %v4552_v11, %v4562_v17  ;;  %v2213_v48 = vpack.c.bf16 %v4562_v17, %v4555_v13  ;;  %v4081_v13 = vld [vmem:[%s4924_s6 + $0x128] sm:$0xff]   ;;  %v4765_v17 = vld [vmem:[%s4924_s6 + $0x238] sm:$0xff]   ;;  %v4091_v11 = vld [vmem:[%s4924_s6 + $0x160] sm:$0xff]  }
 0x170   : > { %v1548_v22 = vadd.f32 %v3188_v54, %v1514_v20  ;;  %v3635_v23 = vpop.f32.mrb[6].mxu0 }
 0x171   : > { %vm1558_vm7 = vcmp.ge.f32.partialorder %v1550_v19, 0.0  ;;  %v1566_v4 = vmul.f32 0.01, %v1550_v19  ;;  %v1551_v31 = vadd.f32 %v3635_v23, %v3188_v54  ;;  %v1517_v32 = vpop.f32.mrb[7].mxu0  ;;  %3653 = vmatmul.mubr.bf16.vlgmr.msra.gmra.mrb[8].mxu0 %v4569_v21 }
 0x172   : > { %vm1556_vm8 = vcmp.ge.f32.partialorder %v1548_v22, 0.0  ;;  %v1564_v49 = vmul.f32 0.01, %v1548_v22  ;;  %v1549_v36 = vadd.f32 %v3188_v54, %v1517_v32  ;;  %3661 = vmatpush3.bf16.msra.mxu0 %v4055_v46  ;;  %v4073_v32 = vld [vmem:[%s4924_s6 + $0x108] sm:$0xff]  }
 0x173   : > { %v4577_v40 = vsel %vm1558_vm7, %v1550_v19, %v1566_v4  ;;  %vm1559_vm9 = vcmp.ge.f32.partialorder %v1551_v31, 0.0  ;;  %v1567_v41 = vmul.f32 0.01, %v1551_v31  ;;  %3662 = vmatprep.subr.bf16.mxu0 %v4057_v3  ;;  %v4591_v58 = vld [vmem:[#allocation2 + $0x32] sm:$0xff] }
 0x174   : > { %1603 = vst [vmem:[#allocation2 + $0x71] sm:$0xff] %v4577_v40  ;;  %v4580_v44 = vsel %vm1556_vm8, %v1548_v22, %v1564_v49  ;;  %vm1557_vm10 = vcmp.ge.f32.partialorder %v1549_v36, 0.0  ;;  %v1565_v52 = vmul.f32 0.01, %v1549_v36  ;;  %v4582_v53 = vld [vmem:[#allocation2 + $0x12] sm:$0xff]  ;;  %v4071_v22 = vld [vmem:[%s4924_s6 + $0x100] sm:$0xff]  }
 0x175   : > { %1601 = vst [vmem:[#allocation2 + $0x51] sm:$0xff] %v4580_v44  ;;  %v4588_v56 = vsel %vm1559_vm9, %v1551_v31, %v1567_v41  ;;  %v1913_v57 = vpack.c.bf16 %v4582_v53, %v1888_v37  ;;  %v4595_v59 = vpack.c.bf16 %v4580_v44, %v4558_v15  ;;  %v4597_v61 = vld [vmem:[#allocation2 + $0x42] sm:$0xff]  ;;  %v1606_v25 = vld [vmem:[#allocation2 + $0x10] sm:$0xff]  ;;  %v4717_v41 = vld [vmem:[%s4924_s6 + $0x218] sm:$0xff]  }
 0x176   : > { %1604 = vst [vmem:[#allocation2 + $0x81] sm:$0xff] %v4588_v56  ;;  %v4600_v62 = vsel %vm1557_vm10, %v1549_v36, %v1565_v52  ;;  %v4602_v24 = vld [vmem:[#allocation2 + $0x22] sm:$0xff]  ;;  %3663 = vmatpush3.bf16.msra.mxu0 %v4057_v3  ;;  %v2216_v26 = vpack.c.bf16 %v4588_v56, %v4577_v40  ;;  %v2364_v27 = vpack.c.bf16 %v4597_v61, %v4591_v58  ;;  %v1608_v16 = vld [vmem:[#allocation2 + $0x30] sm:$0xff] }
 0x177   : > { %1602 = vst [vmem:[#allocation2 + $0x61] sm:$0xff] %v4600_v62  ;;  %3700 = vmatprep.mubr.bf16.mxu1 %v1913_v57  ;;  %v4611_v28 = vpack.c.bf16 %v4591_v58, %v4602_v24  ;;  %3656 = vmatprep.mubr.bf16.mxu0 %v4595_v59  ;;  %v4619_v30 = vpack.c.bf16 %v4577_v40, %v4600_v62  ;;  %v2039_v50 = vld [vmem:[#allocation2 + $0x20] sm:$0xff]  ;;  %v4693_v3 = vld [vmem:[%s4924_s6 + $0x208] sm:$0xff]   ;;  %v4705_v4 = vld [vmem:[%s4924_s6 + $0x210] sm:$0xff]  }
 0x178   : > { %3664 = vmatprep.subr.bf16.mxu0 %v4059_v6  ;;  %v2215_v34 = vpack.c.bf16 %v4600_v62, %v4580_v44  ;;  %v2363_v38 = vpack.c.bf16 %v4602_v24, %v4582_v53  ;;  %v1629_v39 = vpack.c.bf16 %v1606_v25, %v4119_v35  ;;  %v2063_v63 = vpack.c.bf16 %v2039_v50, %v1606_v25  ;;  %v2041_v19 = vld [vmem:[#allocation2 + $0x40] sm:$0xff]  ;;  %v4075_v52 = vld [vmem:[%s4924_s6 + $0x110] sm:$0xff]   ;;  %v4092_v15 = vld [vmem:[%s4924_s6 + $0x168] sm:$0xff]  }
 0x179   : > { %3701 = vmatmul.mubr.bf16.vlgmr.msra.gmra.mrb[0].mxu1 %v4611_v28  ;;  %3657 = vmatmul.mubr.bf16.gmra.mrb[12].mxu0 %v4619_v30  ;;  %v4685_v18 = vpack.c.bf16 %v1608_v16, %v2039_v50  ;;  %v2064_v31 = vpack.c.bf16 %v2041_v19, %v1608_v16  ;;  %v4731_v57 = vld [vmem:[%s4924_s6 + $0x220] sm:$0xff]   ;;  %v4088_v50 = vld [vmem:[%s4924_s6 + $0x148] sm:$0xff]   ;;  %v4094_v40 = vld [vmem:[%s4924_s6 + $0x178] sm:$0xff]  }
 0x17a   : > { %3709 = vmatpush3.bf16.msra.mxu1 %v4546_v51  ;;  %3665 = vmatpush3.bf16.msra.mxu0 %v4059_v6  ;;  %v4095_v44 = vld [vmem:[%s4924_s6 + $0x180] sm:$0xff]   ;;  %v4096_v53 = vld [vmem:[%s4924_s6 + $0x188] sm:$0xff]   ;;  %v4097_v62 = vld [vmem:[%s4924_s6 + $0x190] sm:$0xff]  }
 0x17b   : > { %3710 = vmatprep.subr.bf16.mxu1 %v4058_v29  ;;  %3676 = vmatprep.mubr.bf16.mxu0 %v1629_v39  ;;  %v4646_v54 = vld [vmem:[#allocation2 + $0x72] sm:$0xff] }
 0x17c   : > { %v4635_v43 = vld [vmem:[#allocation2 + $0x52] sm:$0xff]  ;;  %3666 = vmatprep.subr.bf16.mxu0 %v4061_v33 }
 0x17d   : > { %v4642_v46 = vpack.c.bf16 %v4635_v43, %v4597_v61  ;;  %v1610_v12 = vld [vmem:[#allocation2 + $0x50] sm:$0xff]  ;;  %v4723_v6 = vld [vmem:[#allocation2 + $0x80] sm:$0xff]  ;;  %v4098_v58 = vld [vmem:[%s4924_s6 + $0x198] sm:$0xff]  }
 0x17e   : > { %3711 = vmatpush3.bf16.msra.mxu1 %v4058_v29  ;;  %v4644_v51 = vld [vmem:[#allocation2 + $0x62] sm:$0xff]  ;;  %3667 = vmatpush3.bf16.msra.mxu0 %v4061_v33  ;;  %v4688_v20 = vpack.c.bf16 %v1610_v12, %v2041_v19  ;;  %v1612_v36 = vld [vmem:[#allocation2 + $0x70] sm:$0xff]  ;;  %v4077_v29 = vld [vmem:[%s4924_s6 + $0x118] sm:$0xff]  }
 0x17f   : > { %3704 = vmatprep.mubr.bf16.mxu1 %v4642_v46  ;;  %3712 = vmatprep.subr.bf16.mxu1 %v4060_v42  ;;  %v4651_v55 = vpack.c.bf16 %v4646_v54, %v4644_v51  ;;  %v2365_v2 = vpack.c.bf16 %v4644_v51, %v4635_v43  ;;  %v2043_v23 = vld [vmem:[#allocation2 + $0x60] sm:$0xff]  ;;  %v2066_v25 = vpack.c.bf16 %v4723_v6, %v1612_v36  ;;  %v4755_v39 = vld [vmem:[%s4924_s6 + $0x230] sm:$0xff]   ;;  %v4104_v51 = vld [vmem:[%s4924_s6 + $0x1c8] sm:$0xff]  }
 0x180   : > { %3668 = vmatprep.subr.bf16.mxu0 %v4063_v45  ;;  %v2065_v49 = vpack.c.bf16 %v2043_v23, %v1610_v12  ;;  %v4711_v37 = vpack.c.bf16 %v1612_v36, %v2043_v23  ;;  %v4079_v33 = vld [vmem:[%s4924_s6 + $0x120] sm:$0xff]  }
 0x181   : > { %3705 = vmatmul.mubr.bf16.gmra.mrb[4].mxu1 %v4651_v55  ;;  %v4828_v24 = vld [vmem:[#allocation2 + $0x82] sm:$0xff] }
 0x182   : > { %3713 = vmatpush3.bf16.msra.mxu1 %v4060_v42  ;;  %3724 = vmatprep.mubr.bf16.mxu1 %v2063_v63  ;;  %v4085_v42 = vld [vmem:[%s4924_s6 + $0x138] sm:$0xff]   ;;  %v4099_v61 = vld [vmem:[%s4924_s6 + $0x1a0] sm:$0xff]   ;;  %v2517_v63 = vpack.c.bf16 %v4119_v35, %v4723_v6  ;;  %v4108_v35 = vld [vmem:[%s4924_s6 + $0x1e8] sm:$0xff]  }
 0x183   : > { %3714 = vmatprep.subr.bf16.mxu1 %v4062_v60  ;;  %3669 = vmatpush3.bf16.msra.mxu0 %v4063_v45  ;;  %v4087_v45 = vld [vmem:[%s4924_s6 + $0x140] sm:$0xff]  }
 0x184   : > { %3670 = vmatprep.subr.bf16.mxu0 %v4065_v0  ;;  %v4103_v43 = vld [vmem:[%s4924_s6 + $0x1c0] sm:$0xff]  }
 0x186   : > { %3715 = vmatpush3.bf16.msra.mxu1 %v4062_v60  ;;  %v4090_v60 = vld [vmem:[%s4924_s6 + $0x158] sm:$0xff]  }
 0x187   : > { %3716 = vmatprep.subr.bf16.mxu1 %v4064_v47  ;;  %3671 = vmatpush3.bf16.msra.mxu0 %v4065_v0  ;;  %v4106_v0 = vld [vmem:[%s4924_s6 + $0x1d8] sm:$0xff]  }
 0x188   : > { %3672 = vmatprep.subr.bf16.mxu0 %v4067_v5 }
 0x18a   : > { %3717 = vmatpush3.bf16.msra.mxu1 %v4064_v47  ;;  %v4109_v47 = vld [vmem:[%s4924_s6 + $0x1f0] sm:$0xff]  }
 0x18b   : > { %3718 = vmatprep.subr.bf16.mxu1 %v4066_v7  ;;  %3673 = vmatpush3.bf16.msra.mxu0 %v4067_v5  ;;  %v2646_v5 = vld [vmem:[#allocation2 + $0x91] sm:$0xff] }
 0x18c   : > { %3674 = vmatprep.subr.bf16.mxu0 %v4069_v8 }
 0x18e   : > { %3719 = vmatpush3.bf16.msra.mxu1 %v4066_v7  ;;  %v2667_v7 = vpack.c.bf16 %v2646_v5, %v4588_v56  ;;  %v2796_v56 = vld [vmem:[#allocation2 + $0x92] sm:$0xff] }
 0x18f   : > { %3720 = vmatprep.subr.bf16.mxu1 %v4068_v9  ;;  %3675 = vmatpush3.bf16.msra.mxu0 %v4069_v8 }
 0x190   : > { %3828 = vmatprep.subr.bf16.mxu0 %v4680_v10 }
 0x192   : > { %3721 = vmatpush3.bf16.msra.mxu1 %v4068_v9  ;;  %3677 = vmatmul.mubr.bf16.vlgmr.msra.gmra.mrb[8].mxu0 %v4685_v18 }
 0x193   : > { %3722 = vmatprep.subr.bf16.mxu1 %v4070_v14  ;;  %3680 = vmatprep.mubr.bf16.mxu0 %v4688_v20 }
 0x194   : > { %3829 = vmatpush3.bf16.msra.mxu0 %v4680_v10 }
 0x195   : > { %3830 = vmatprep.subr.bf16.mxu0 %v4693_v3 }
 0x196   : > { %3723 = vmatpush3.bf16.msra.mxu1 %v4070_v14 }
 0x197   : > { %3732 = vmatprep.subr.bf16.mxu1 %v4071_v22 }
 0x198   : > { %3831 = vmatpush3.bf16.msra.mxu0 %v4693_v3 }
 0x199   : > { %3725 = vmatmul.mubr.bf16.vlgmr.msra.gmra.mrb[0].mxu1 %v2064_v31  ;;  %3832 = vmatprep.subr.bf16.mxu0 %v4705_v4  ;;  %v3389_v31 = vld [vmem:[%s4925_s7] ss:$0 sm:$0xff] }
 0x19a   : > { %3728 = vmatprep.mubr.bf16.mxu1 %v2065_v49  ;;  %3733 = vmatpush3.bf16.msra.mxu1 %v4071_v22 }
 0x19b   : > { %3734 = vmatprep.subr.bf16.mxu1 %v4073_v32  ;;  %3681 = vmatmul.mubr.bf16.gmra.mrb[12].mxu0 %v4711_v37 }
 0x19c   : > { %3833 = vmatpush3.bf16.msra.mxu0 %v4705_v4  ;;  %3844 = vmatprep.mubr.bf16.mxu0 %v4611_v28  ;;  %v4742_v28 = vld [vmem:[%s4924_s6 + $0x228] sm:$0xff]  }
 0x19d   : > { %3834 = vmatprep.subr.bf16.mxu0 %v4717_v41 }
 0x19e   : > { %3735 = vmatpush3.bf16.msra.mxu1 %v4073_v32 }
 0x19f   : > { %3736 = vmatprep.subr.bf16.mxu1 %v4075_v52 }
 0x1a0   : > { %3835 = vmatpush3.bf16.msra.mxu0 %v4717_v41 }
 0x1a1   : > { %3729 = vmatmul.mubr.bf16.gmra.mrb[4].mxu1 %v2066_v25  ;;  %3836 = vmatprep.subr.bf16.mxu0 %v4731_v57 }
 0x1a2   : > { %3737 = vmatpush3.bf16.msra.mxu1 %v4075_v52  ;;  %3748 = vmatprep.mubr.bf16.mxu1 %v2213_v48  ;;  %v4083_v48 = vld [vmem:[%s4924_s6 + $0x130] sm:$0xff]  }
 0x1a3   : > { %3738 = vmatprep.subr.bf16.mxu1 %v4077_v29 }
 0x1a4   : > { %3837 = vmatpush3.bf16.msra.mxu0 %v4731_v57 }
 0x1a5   : > { %3838 = vmatprep.subr.bf16.mxu0 %v4742_v28 }
 0x1a6   : > { %3739 = vmatpush3.bf16.msra.mxu1 %v4077_v29 }
 0x1a7   : > { %3740 = vmatprep.subr.bf16.mxu1 %v4079_v33 }
 0x1a8   : > { %3839 = vmatpush3.bf16.msra.mxu0 %v4742_v28 }
 0x1a9   : > { %3840 = vmatprep.subr.bf16.mxu0 %v4755_v39 }
 0x1aa   : > { %3741 = vmatpush3.bf16.msra.mxu1 %v4079_v33 }
 0x1ab   : > { %3742 = vmatprep.subr.bf16.mxu1 %v4081_v13 }
 0x1ac   : > { %3841 = vmatpush3.bf16.msra.mxu0 %v4755_v39 }
 0x1ad   : > { %3842 = vmatprep.subr.bf16.mxu0 %v4765_v17 }
 0x1ae   : > { %3743 = vmatpush3.bf16.msra.mxu1 %v4081_v13 }
 0x1af   : > { %3744 = vmatprep.subr.bf16.mxu1 %v4083_v48 }
 0x1b0   : > { %3843 = vmatpush3.bf16.msra.mxu0 %v4765_v17 }
 0x1b2   : > { %3745 = vmatpush3.bf16.msra.mxu1 %v4083_v48 }
 0x1b3   : > { %3746 = vmatprep.subr.bf16.mxu1 %v4085_v42  ;;  %3845 = vmatmul.mubr.bf16.vlgmr.msra.gmra.mrb[16].mxu0 %v4642_v46  ;;  %v4089_v46 = vld [vmem:[%s4924_s6 + $0x150] sm:$0xff]  }
 0x1b6   : > { %3747 = vmatpush3.bf16.msra.mxu1 %v4085_v42 }
 0x1b7   : > { %3756 = vmatprep.subr.bf16.mxu1 %v4087_v45 }
 0x1b9   : > { %3749 = vmatmul.mubr.bf16.vlgmr.msra.gmra.mrb[0].mxu1 %v2214_v1  ;;  %v4093_v1 = vld [vmem:[%s4924_s6 + $0x170] sm:$0xff]  }
 0x1ba   : > { %3752 = vmatprep.mubr.bf16.mxu1 %v2215_v34  ;;  %3757 = vmatpush3.bf16.msra.mxu1 %v4087_v45  ;;  %v4101_v34 = vld [vmem:[%s4924_s6 + $0x1b0] sm:$0xff]  }
 0x1bb   : > { %3758 = vmatprep.subr.bf16.mxu1 %v4088_v50 }
 0x1be   : > { %3759 = vmatpush3.bf16.msra.mxu1 %v4088_v50 }
 0x1bf   : > { %3760 = vmatprep.subr.bf16.mxu1 %v4089_v46 }
 0x1c1   : > { %3753 = vmatmul.mubr.bf16.gmra.mrb[4].mxu1 %v2216_v26  ;;  %v2366_v26 = vpack.c.bf16 %v4828_v24, %v4646_v54  ;;  %v4105_v54 = vld [vmem:[%s4924_s6 + $0x1d0] sm:$0xff]  }
 0x1c2   : > { %3761 = vmatpush3.bf16.msra.mxu1 %v4089_v46  ;;  %3772 = vmatprep.mubr.bf16.mxu1 %v2363_v38  ;;  %v4102_v38 = vld [vmem:[%s4924_s6 + $0x1b8] sm:$0xff]  }
 0x1c3   : > { %3762 = vmatprep.subr.bf16.mxu1 %v4090_v60 }
 0x1c6   : > { %3763 = vmatpush3.bf16.msra.mxu1 %v4090_v60 }
 0x1c7   : > { %3764 = vmatprep.subr.bf16.mxu1 %v4091_v11 }
 0x1ca   : > { %3765 = vmatpush3.bf16.msra.mxu1 %v4091_v11 }
 0x1cb   : > { %3766 = vmatprep.subr.bf16.mxu1 %v4092_v15 }
 0x1ce   : > { %3767 = vmatpush3.bf16.msra.mxu1 %v4092_v15 }
 0x1cf   : > { %3768 = vmatprep.subr.bf16.mxu1 %v4093_v1 }
 0x1d2   : > { %3769 = vmatpush3.bf16.msra.mxu1 %v4093_v1 }
 0x1d3   : > { %3770 = vmatprep.subr.bf16.mxu1 %v4094_v40 }
 0x1d6   : > { %3771 = vmatpush3.bf16.msra.mxu1 %v4094_v40 }
 0x1d7   : > { %3780 = vmatprep.subr.bf16.mxu1 %v4095_v44 }
 0x1d9   : > { %3773 = vmatmul.mubr.bf16.vlgmr.msra.gmra.mrb[0].mxu1 %v2364_v27  ;;  %v4100_v27 = vld [vmem:[%s4924_s6 + $0x1a8] sm:$0xff]  }
 0x1da   : > { %3776 = vmatprep.mubr.bf16.mxu1 %v2365_v2  ;;  %3781 = vmatpush3.bf16.msra.mxu1 %v4095_v44  ;;  %v4107_v2 = vld [vmem:[%s4924_s6 + $0x1e0] sm:$0xff]  }
 0x1db   : > { %3782 = vmatprep.subr.bf16.mxu1 %v4096_v53 }
 0x1de   : > { %3783 = vmatpush3.bf16.msra.mxu1 %v4096_v53 }
 0x1df   : > { %3784 = vmatprep.subr.bf16.mxu1 %v4097_v62 }
 0x1e1   : > { %3777 = vmatmul.mubr.bf16.gmra.mrb[4].mxu1 %v2366_v26 }
 0x1e2   : > { %3785 = vmatpush3.bf16.msra.mxu1 %v4097_v62  ;;  %3796 = vmatprep.mubr.bf16.mxu1 %v4685_v18 }
 0x1e3   : > { %3786 = vmatprep.subr.bf16.mxu1 %v4098_v58 }
 0x1e6   : > { %3787 = vmatpush3.bf16.msra.mxu1 %v4098_v58 }
 0x1e7   : > { %3788 = vmatprep.subr.bf16.mxu1 %v4099_v61 }
 0x1ea   : > { %3789 = vmatpush3.bf16.msra.mxu1 %v4099_v61 }
 0x1eb   : > { %3790 = vmatprep.subr.bf16.mxu1 %v4100_v27 }
 0x1ee   : > { %3791 = vmatpush3.bf16.msra.mxu1 %v4100_v27 }
 0x1ef   : > { %3792 = vmatprep.subr.bf16.mxu1 %v4101_v34 }
 0x1f2   : > { %3793 = vmatpush3.bf16.msra.mxu1 %v4101_v34 }
 0x1f3   : > { %3794 = vmatprep.subr.bf16.mxu1 %v4102_v38 }
 0x1f6   : > { %3795 = vmatpush3.bf16.msra.mxu1 %v4102_v38 }
 0x1f7   : > { %3804 = vmatprep.subr.bf16.mxu1 %v4103_v43 }
 0x1f9   : > { %3797 = vmatmul.mubr.bf16.vlgmr.msra.gmra.mrb[0].mxu1 %v4688_v20 }
 0x1fa   : > { %3800 = vmatprep.mubr.bf16.mxu1 %v4711_v37  ;;  %3805 = vmatpush3.bf16.msra.mxu1 %v4103_v43 }
 0x1fb   : > { %3806 = vmatprep.subr.bf16.mxu1 %v4104_v51 }
 0x1fe   : > { %3807 = vmatpush3.bf16.msra.mxu1 %v4104_v51 }
 0x1ff   : > { %3808 = vmatprep.subr.bf16.mxu1 %v4105_v54 }
 0x201   : > { %3801 = vmatmul.mubr.bf16.gmra.mrb[4].mxu1 %v2517_v63 }
 0x202   : > { %3809 = vmatpush3.bf16.msra.mxu1 %v4105_v54  ;;  %3820 = vmatprep.mubr.bf16.mxu1 %v4569_v21  ;;  %v4110_v21 = vld [vmem:[%s4924_s6 + $0x1f8] sm:$0xff]  }
 0x203   : > { %3810 = vmatprep.subr.bf16.mxu1 %v4106_v0 }
 0x206   : > { %3811 = vmatpush3.bf16.msra.mxu1 %v4106_v0 }
 0x207   : > { %3812 = vmatprep.subr.bf16.mxu1 %v4107_v2 }
 0x20a   : > { %3813 = vmatpush3.bf16.msra.mxu1 %v4107_v2 }
 0x20b   : > { %3814 = vmatprep.subr.bf16.mxu1 %v4108_v35 }
 0x20e   : > { %3815 = vmatpush3.bf16.msra.mxu1 %v4108_v35 }
 0x20f   : > { %3816 = vmatprep.subr.bf16.mxu1 %v4109_v47 }
 0x212   : > { %3817 = vmatpush3.bf16.msra.mxu1 %v4109_v47 }
 0x213   : > { %3818 = vmatprep.subr.bf16.mxu1 %v4110_v21 }
 0x216   : > { %3819 = vmatpush3.bf16.msra.mxu1 %v4110_v21 }
 0x217   : > { %3852 = vmatprep.subr.bf16.mxu1 %v4680_v10 }
 0x219   : > { %3821 = vmatmul.mubr.bf16.vlgmr.msra.gmra.mrb[0].mxu1 %v4595_v59  ;;  %v2817_v59 = vpack.c.bf16 %v2796_v56, %v4828_v24 }
 0x21a   : > { %3824 = vmatprep.mubr.bf16.mxu1 %v4619_v30  ;;  %3860 = vmatpush3.bf16.msra.mxu1 %v4680_v10 }
 0x21b   : > { %3853 = vmatprep.subr.bf16.mxu1 %v4693_v3 }
 0x21e   : > { %3861 = vmatpush3.bf16.msra.mxu1 %v4693_v3 }
 0x21f   : > { %3854 = vmatprep.subr.bf16.mxu1 %v4705_v4 }
 0x221   : > { %3825 = vmatmul.mubr.bf16.gmra.mrb[4].mxu1 %v2667_v7 }
 0x222   : > { %3862 = vmatpush3.bf16.msra.mxu1 %v4705_v4  ;;  %3848 = vmatprep.mubr.bf16.mxu1 %v4651_v55 }
 0x223   : > { %3855 = vmatprep.subr.bf16.mxu1 %v4717_v41 }
 0x226   : > { %3863 = vmatpush3.bf16.msra.mxu1 %v4717_v41 }
 0x227   : > { %3856 = vmatprep.subr.bf16.mxu1 %v4731_v57 }
 0x22a   : > { %3864 = vmatpush3.bf16.msra.mxu1 %v4731_v57 }
 0x22b   : > { %3857 = vmatprep.subr.bf16.mxu1 %v4742_v28 }
 0x22e   : > { %3865 = vmatpush3.bf16.msra.mxu1 %v4742_v28 }
 0x22f   : > { %3858 = vmatprep.subr.bf16.mxu1 %v4755_v39 }
 0x232   : > { %3866 = vmatpush3.bf16.msra.mxu1 %v4755_v39 }
 0x233   : > { %3859 = vmatprep.subr.bf16.mxu1 %v4765_v17 }
 0x236   : > { %3867 = vmatpush3.bf16.msra.mxu1 %v4765_v17 }
 0x239   : > { %3849 = vmatmul.mubr.bf16.vlgmr.msra.gmra.mrb[4].mxu1 %v2817_v59 }
 0x265   : > { %v3678_v30 = vpop.f32.mrb[8].mxu0 }
 0x266   : > { %v1857_v55 = vpop.f32.mrb[9].mxu0 }
 0x267   : > { %v3679_v8 = vpop.f32.mrb[10].mxu0 }
 0x268   : > { %v1860_v9 = vpop.f32.mrb[11].mxu0 }
 0x26e   : > { %v3682_v10 = vpop.f32.mrb[12].mxu0 }
 0x26f   : > { %v1873_v12 = vpop.f32.mrb[13].mxu0 }
 0x270   : > { %v3683_v14 = vpop.f32.mrb[14].mxu0 }
 0x271   : > { %v1876_v16 = vpop.f32.mrb[15].mxu0 }
 0x286   : > { %v3846_v18 = vpop.f32.mrb[16].mxu0 }
 0x287   : > { %v2900_v19 = vpop.f32.mrb[17].mxu0 }
 0x288   : > { %v3847_v20 = vpop.f32.mrb[18].mxu0 }
 0x289   : > { %v2903_v3 = vpop.f32.mrb[19].mxu0 }
 0x2ec   : > { %v3822_v22 = vpop.f32.mrb[0].mxu1 }
 0x2ed   : > { %v3868_v23 = vadd.f32 %v3822_v22, %v3678_v30  ;;  %v2750_v4 = vpop.f32.mrb[1].mxu1 }
 0x2ee   : > { %v3870_v32 = vadd.f32 %v2750_v4, %v1857_v55  ;;  %v3823_v49 = vpop.f32.mrb[2].mxu1 }
 0x2ef   : > { %v3869_v36 = vadd.f32 %v3868_v23, %v3846_v18  ;;  %v3872_v37 = vadd.f32 %v3823_v49, %v3679_v8  ;;  %v2753_v41 = vpop.f32.mrb[3].mxu1 }
 0x2f0   : > { %v3871_v52 = vadd.f32 %v3870_v32, %v2900_v19  ;;  %v3874_v6 = vadd.f32 %v2753_v41, %v1860_v9 }
 0x2f1   : > { %v2948_v57 = vadd.f32 %v3869_v36, %v3389_v31  ;;  %v3873_v25 = vadd.f32 %v3872_v37, %v3847_v20 }
 0x2f2   : > { %v2946_v29 = vadd.f32 %v3871_v52, %v3389_v31  ;;  %v3875_v28 = vadd.f32 %v3874_v6, %v2903_v3 }
 0x2f3   : > { %vm2956_vm11 = vcmp.ge.f32.partialorder %v2948_v57, 0.0  ;;  %v2964_v33 = vmul.f32 0.01, %v2948_v57  ;;  %v2949_v39 = vadd.f32 %v3873_v25, %v3389_v31 }
 0x2f4   : > { %vm2954_vm12 = vcmp.ge.f32.partialorder %v2946_v29, 0.0  ;;  %v2962_v13 = vmul.f32 0.01, %v2946_v29  ;;  %v2947_v17 = vadd.f32 %v3875_v28, %v3389_v31 }
 0x2f5   : > { %v2972_v48 = vsel %vm2956_vm11, %v2948_v57, %v2964_v33  ;;  %vm2957_vm13 = vcmp.ge.f32.partialorder %v2949_v39, 0.0  ;;  %v2965_v42 = vmul.f32 0.01, %v2949_v39 }
 0x2f6   : > { %2980 = vst [vmem:[%s4905_s10 + $0x10] sm:$0xff] %v2972_v48  ;;  %v2970_v45 = vsel %vm2954_vm12, %v2946_v29, %v2962_v13  ;;  %vm2955_vm14 = vcmp.ge.f32.partialorder %v2947_v17, 0.0  ;;  %v2963_v50 = vmul.f32 0.01, %v2947_v17 }
 0x2f7   : > { %2978 = vst [vmem:[%s4905_s10] sm:$0xff] %v2970_v45  ;;  %v2973_v46 = vsel %vm2957_vm13, %v2949_v39, %v2965_v42 }
 0x2f8   : > { %2981 = vst [vmem:[%s4905_s10 + $0x18] sm:$0xff] %v2973_v46  ;;  %v2971_v60 = vsel %vm2955_vm14, %v2947_v17, %v2963_v50 }
 0x2f9   : > { %2979 = vst [vmem:[%s4905_s10 + $0x8] sm:$0xff] %v2971_v60 }
 0x30c   : > { %v3850_v11 = vpop.f32.mrb[4].mxu1 }
 0x30d   : > { %v3876_v15 = vadd.f32 %v3850_v11, %v3682_v10  ;;  %v2916_v1 = vpop.f32.mrb[5].mxu1 }
 0x30e   : > { %v3877_v40 = vadd.f32 %v2916_v1, %v1873_v12  ;;  %v3851_v44 = vpop.f32.mrb[6].mxu1 }
 0x30f   : > { %v2952_v53 = vadd.f32 %v3876_v15, %v3389_v31  ;;  %v3878_v62 = vadd.f32 %v3851_v44, %v3683_v14  ;;  %v2919_v24 = vpop.f32.mrb[7].mxu1 }
 0x310   : > { %v2950_v26 = vadd.f32 %v3877_v40, %v3389_v31  ;;  %v3879_v58 = vadd.f32 %v2919_v24, %v1876_v16 }
 0x311   : > { %vm2960_vm15 = vcmp.ge.f32.partialorder %v2952_v53, 0.0  ;;  %v2968_v61 = vmul.f32 0.01, %v2952_v53  ;;  %v2953_v27 = vadd.f32 %v3878_v62, %v3389_v31 }
 0x312   : > { %vm2958_vm0 = vcmp.ge.f32.partialorder %v2950_v26, 0.0  ;;  %v2966_v34 = vmul.f32 0.01, %v2950_v26  ;;  %v2951_v38 = vadd.f32 %v3879_v58, %v3389_v31 }
 0x313   : > { %v2976_v43 = vsel %vm2960_vm15, %v2952_v53, %v2968_v61  ;;  %vm2961_vm1 = vcmp.ge.f32.partialorder %v2953_v27, 0.0  ;;  %v2969_v51 = vmul.f32 0.01, %v2953_v27 }
 0x314   : > { %2984 = vst [vmem:[%s4905_s10 + $0x30] sm:$0xff] %v2976_v43  ;;  %v2974_v54 = vsel %vm2958_vm0, %v2950_v26, %v2966_v34  ;;  %vm2959_vm2 = vcmp.ge.f32.partialorder %v2951_v38, 0.0  ;;  %v2967_v63 = vmul.f32 0.01, %v2951_v38 }
 0x315   : > { %2982 = vst [vmem:[%s4905_s10 + $0x20] sm:$0xff] %v2974_v54  ;;  %v2977_v0 = vsel %vm2961_vm1, %v2953_v27, %v2969_v51 }
 0x316   : > { %2985 = vst [vmem:[%s4905_s10 + $0x38] sm:$0xff] %v2977_v0  ;;  %v2975_v2 = vsel %vm2959_vm2, %v2951_v38, %v2967_v63 }
 0x317   : > { %2983 = vst [vmem:[%s4905_s10 + $0x28] sm:$0xff] %v2975_v2 }
 0x318 PF: > { %s18_s27 = sadd.s32 1, %s4117_s27  }
 0x319   : > { %p15_p4 = scmp.ge.s32.totalorder %s18_s27, 4  }
 0x31b   :  { %17 = sbr.rel (!%p15_p4) target bundleno = 1 (0x1), region = 111 }

</bundles_post_ra>
